<compile_context>
chip_gen: v5e
topology: v5e:2x2
jax: 0.10.0
libtpu: 0.0.40
codegen_flags: <defaults>
</compile_context>

<pallas_src>
import functools

import jax
import jax.numpy as jnp
from jax.experimental import pallas as pl
from jax.experimental.pallas import tpu as pltpu

Z_DIM = 100
N_CLASSES = 10
EMB_DIM = 10
H1 = 256
H2 = 512
IMAGE_DIM = 28 * 28  # 784


def _generator_kernel(noise_ref, lbl_ref, clsb_ref, w1_ref, w2_ref, b2_ref,
                      w3_ref, b3_ref, o_ref):
    tb = lbl_ref.shape[0]

    # fc1: noise @ W1[:100]  (bf16 x bf16 -> f32 accumulation on the MXU).
    h1 = jnp.dot(noise_ref[...], w1_ref[...],
                 preferred_element_type=jnp.float32)          # (TB, 256) f32

    # Fused embedding lookup: select the per-sample class-bias row (which
    # already folds emb @ W1[100:110] + b1, computed in f32) via a 10-way
    # masked accumulate.  Pure VPU work, negligible next to the matmuls.
    lbl = lbl_ref[...]                                        # (TB, 1) int32
    clsb = jnp.zeros((tb, H1), jnp.float32)
    for c in range(N_CLASSES):
        m = (lbl == c).astype(jnp.float32)                    # (TB, 1)
        clsb = clsb + m * clsb_ref[c:c + 1, :]                # bcast (1,256)

    h1 = h1 + clsb
    h1 = jnp.where(h1 > 0, h1, 0.2 * h1)                      # LeakyReLU(0.2)

    # fc2 + LeakyReLU(0.2)
    h2 = jnp.dot(h1.astype(jnp.bfloat16), w2_ref[...],
                 preferred_element_type=jnp.float32)          # (TB, 512) f32
    h2 = h2 + b2_ref[...]
    h2 = jnp.where(h2 > 0, h2, 0.2 * h2)

    # fc3 + tanh
    h3 = jnp.dot(h2.astype(jnp.bfloat16), w3_ref[...],
                 preferred_element_type=jnp.float32)          # (TB, 784) f32
    h3 = h3 + b3_ref[...]
    o_ref[...] = jnp.tanh(h3)


def prepare_kernel_params(params):
    """One-time prep: fold emb-table / b1 into an f32 class-bias table, cast
    the three weight matrices to bf16 for the MXU.  Biases stay f32."""
    cls_bias = (params["emb"] @ params["w1"][Z_DIM:, :] + params["b1"]
                ).astype(jnp.float32)                          # (10, 256)
    return {
        "cls_bias": cls_bias,
        "w1n": params["w1"][:Z_DIM, :].astype(jnp.bfloat16),   # (100, 256)
        "w2": params["w2"].astype(jnp.bfloat16),               # (256, 512)
        "b2": params["b2"].astype(jnp.float32),                # (1, 512)
        "w3": params["w3"].astype(jnp.bfloat16),               # (512, 784)
        "b3": params["b3"].astype(jnp.float32),                # (1, 784)
    }


def generator_forward(noise, labels, kparams, *, tb=None):
    """noise: (B, 100) f32, labels: (B,) int32 in [0, 10) -> (B, 784) f32."""
    B = noise.shape[0]
    if tb is None:
        tb = min(256, max(8, -(-B // 8) * 8))    # multiple of 8, capped at 256
    bp = -(-B // tb) * tb                        # batch padded to tile multiple

    nz = noise.astype(jnp.bfloat16)                            # (B, 100) bf16
    lbl = labels.astype(jnp.int32).reshape(B, 1)               # (B, 1) i32
    if bp != B:
        nz = jnp.pad(nz, ((0, bp - B), (0, 0)))
        lbl = jnp.pad(lbl, ((0, bp - B), (0, 0)))              # pad -> class 0

    grid = (bp // tb,)
    resident = lambda shape: pl.BlockSpec(shape, lambda i: (0, 0))

    cost = pl.CostEstimate(
        flops=2 * bp * (Z_DIM * H1 + H1 * H2 + H2 * IMAGE_DIM),
        transcendentals=bp * IMAGE_DIM,
        bytes_accessed=(
            (Z_DIM * H1 + H1 * H2 + H2 * IMAGE_DIM) * 2        # bf16 weights
            + (N_CLASSES * H1 + H2 + IMAGE_DIM) * 4            # f32 table/bias
            + bp * (Z_DIM * 2 + 4 + IMAGE_DIM * 4)))           # acts / out

    out = pl.pallas_call(
        _generator_kernel,
        out_shape=jax.ShapeDtypeStruct((bp, IMAGE_DIM), jnp.float32),
        grid=grid,
        in_specs=[
            pl.BlockSpec((tb, Z_DIM), lambda i: (i, 0)),       # noise tile
            pl.BlockSpec((tb, 1), lambda i: (i, 0)),           # labels tile
            resident((N_CLASSES, H1)),                         # class-bias tbl
            resident((Z_DIM, H1)),                             # w1 (noise half)
            resident((H1, H2)),                                # w2
            resident((1, H2)),                                 # b2
            resident((H2, IMAGE_DIM)),                         # w3
            resident((1, IMAGE_DIM)),                          # b3
        ],
        out_specs=pl.BlockSpec((tb, IMAGE_DIM), lambda i: (i, 0)),
        compiler_params=pltpu.CompilerParams(
            dimension_semantics=("parallel",)),
        cost_estimate=cost,
    )(nz, lbl, kparams["cls_bias"], kparams["w1n"], kparams["w2"],
      kparams["b2"], kparams["w3"], kparams["b3"])
    return out[:B] if bp != B else out


def init_params(key):
    """Deterministic synthetic parameters matching the PyTorch module shapes.

    PyTorch stores Linear weights as (out, in); we keep them transposed
    ((in, out)) so the kernel does x @ W directly.  Biases are (1, out)."""
    ks = jax.random.split(key, 7)

    def lin(kw, fan_in, fan_out):
        scale = 1.0 / jnp.sqrt(fan_in)
        return jax.random.uniform(kw, (fan_in, fan_out), jnp.float32,
                                  minval=-scale, maxval=scale)

    return {
        "emb": jax.random.normal(ks[0], (N_CLASSES, EMB_DIM), jnp.float32),
        "w1": lin(ks[1], Z_DIM + EMB_DIM, H1),
        "b1": jax.random.uniform(ks[2], (1, H1), jnp.float32,
                                 minval=-0.1, maxval=0.1),
        "w2": lin(ks[3], H1, H2),
        "b2": jax.random.uniform(ks[4], (1, H2), jnp.float32,
                                 minval=-0.1, maxval=0.1),
        "w3": lin(ks[5], H2, IMAGE_DIM),
        "b3": jax.random.uniform(ks[6], (1, IMAGE_DIM), jnp.float32,
                                 minval=-0.1, maxval=0.1),
    }


def _reference_forward(noise, labels, params):
    # Pure-JAX f32 reference with the original module semantics.
    emb = jnp.take(params["emb"], labels, axis=0)
    x = jnp.concatenate([noise, emb], axis=1)
    h1 = x @ params["w1"] + params["b1"]
    h1 = jnp.where(h1 > 0, h1, 0.2 * h1)
    h2 = h1 @ params["w2"] + params["b2"]
    h2 = jnp.where(h2 > 0, h2, 0.2 * h2)
    return jnp.tanh(h2 @ params["w3"] + params["b3"])


if __name__ == "__main__":
    key = jax.random.PRNGKey(0)
    k_params, k_noise, k_labels = jax.random.split(key, 3)

    B, TB = 64, 16          # small demo shapes; grid = (4,) batch tiles
    params = init_params(k_params)
    kparams = prepare_kernel_params(params)
    noise = jax.random.normal(k_noise, (B, Z_DIM), jnp.float32)
    labels = jax.random.randint(k_labels, (B,), 0, N_CLASSES, jnp.int32)

    fwd = jax.jit(functools.partial(generator_forward, tb=TB))
    out = jax.block_until_ready(fwd(noise, labels, kparams))

    ref = jax.block_until_ready(_reference_forward(noise, labels, params))
    assert out.shape == (B, IMAGE_DIM)
    # bf16 weights/activations in the dots vs f32 reference: expect ~1e-2
    # absolute error on tanh outputs in [-1, 1].
    err = float(jnp.max(jnp.abs(out - ref)))
    assert err < 5e-2, f"max abs err {err}"

    print("KERNEL_OK")
</pallas_src>

<mosaic_0001>
module attributes {stable_mosaic.version = 11 : i64} {
  func.func @_generator_kernel(%arg0: i32, %arg1: memref<16x100xbf16, #tpu.memory_space<vmem>>, %arg2: memref<16x1xi32, #tpu.memory_space<vmem>>, %arg3: memref<10x256xf32, #tpu.memory_space<vmem>>, %arg4: memref<100x256xbf16, #tpu.memory_space<vmem>>, %arg5: memref<256x512xbf16, #tpu.memory_space<vmem>>, %arg6: memref<1x512xf32, #tpu.memory_space<vmem>>, %arg7: memref<512x784xbf16, #tpu.memory_space<vmem>>, %arg8: memref<1x784xf32, #tpu.memory_space<vmem>>, %arg9: memref<16x784xf32, #tpu.memory_space<vmem>>) attributes {dimension_semantics = [#tpu.dimension_semantics<parallel>], iteration_bounds = array<i64: 4>, scalar_prefetch = 0 : i64, scratch_operands = 0 : i64, tpu.core_type = #tpu.core_type<tc>, window_params = [{transform_indices = @transform_0, window_bounds = array<i64: 16, 100>}, {transform_indices = @transform_1, window_bounds = array<i64: 16, 1>}, {pipeline_mode = #tpu.pipeline_mode<synchronous>, transform_indices = @transform_2, window_bounds = array<i64: 10, 256>}, {pipeline_mode = #tpu.pipeline_mode<synchronous>, transform_indices = @transform_3, window_bounds = array<i64: 100, 256>}, {pipeline_mode = #tpu.pipeline_mode<synchronous>, transform_indices = @transform_4, window_bounds = array<i64: 256, 512>}, {pipeline_mode = #tpu.pipeline_mode<synchronous>, transform_indices = @transform_5, window_bounds = array<i64: 1, 512>}, {pipeline_mode = #tpu.pipeline_mode<synchronous>, transform_indices = @transform_6, window_bounds = array<i64: 512, 784>}, {pipeline_mode = #tpu.pipeline_mode<synchronous>, transform_indices = @transform_7, window_bounds = array<i64: 1, 784>}, {transform_indices = @transform_8, window_bounds = array<i64: 16, 784>}]} {
    %c0 = arith.constant 0 : index
    %c0_0 = arith.constant 0 : index
    %0 = vector.load %arg1[%c0, %c0_0] : memref<16x100xbf16, #tpu.memory_space<vmem>>, vector<16x100xbf16>
    %c0_1 = arith.constant 0 : index
    %c0_2 = arith.constant 0 : index
    %1 = vector.load %arg4[%c0_1, %c0_2] : memref<100x256xbf16, #tpu.memory_space<vmem>>, vector<100x256xbf16>
    %cst = arith.constant dense<0.000000e+00> : vector<16x256xf32>
    %2 = tpu.matmul %0, %1, %cst {dimension_numbers = #tpu.dot_dimension_numbers<[1], [0], [0], [1], [0, 0, 1, 1], [], []>} : vector<16x100xbf16>, vector<100x256xbf16>, vector<16x256xf32> -> vector<16x256xf32>
    %c0_3 = arith.constant 0 : index
    %c0_4 = arith.constant 0 : index
    %3 = vector.load %arg2[%c0_3, %c0_4] : memref<16x1xi32, #tpu.memory_space<vmem>>, vector<16x1xi32>
    %cst_5 = arith.constant 0.000000e+00 : f32
    %4 = vector.broadcast %cst_5 : f32 to vector<16x256xf32>
    %c0_i32 = arith.constant 0 : i32
    %5 = vector.broadcast %c0_i32 : i32 to vector<16x1xi32>
    %6 = arith.cmpi eq, %3, %5 : vector<16x1xi32>
    %7 = arith.extui %6 : vector<16x1xi1> to vector<16x1xi32>
    %8 = arith.sitofp %7 : vector<16x1xi32> to vector<16x1xf32>
    %c0_6 = arith.constant 0 : index
    %c0_7 = arith.constant 0 : index
    %9 = vector.load %arg3[%c0_6, %c0_7] : memref<10x256xf32, #tpu.memory_space<vmem>>, vector<1x256xf32>
    %10 = vector.broadcast %8 : vector<16x1xf32> to vector<16x256xf32>
    %11 = vector.broadcast %9 : vector<1x256xf32> to vector<16x256xf32>
    %12 = arith.mulf %10, %11 : vector<16x256xf32>
    %13 = arith.addf %4, %12 : vector<16x256xf32>
    %c1_i32 = arith.constant 1 : i32
    %14 = vector.broadcast %c1_i32 : i32 to vector<16x1xi32>
    %15 = arith.cmpi eq, %3, %14 : vector<16x1xi32>
    %16 = arith.extui %15 : vector<16x1xi1> to vector<16x1xi32>
    %17 = arith.sitofp %16 : vector<16x1xi32> to vector<16x1xf32>
    %c1 = arith.constant 1 : index
    %c0_8 = arith.constant 0 : index
    %18 = vector.load %arg3[%c1, %c0_8] : memref<10x256xf32, #tpu.memory_space<vmem>>, vector<1x256xf32>
    %19 = vector.broadcast %17 : vector<16x1xf32> to vector<16x256xf32>
    %20 = vector.broadcast %18 : vector<1x256xf32> to vector<16x256xf32>
    %21 = arith.mulf %19, %20 : vector<16x256xf32>
    %22 = arith.addf %13, %21 : vector<16x256xf32>
    %c2_i32 = arith.constant 2 : i32
    %23 = vector.broadcast %c2_i32 : i32 to vector<16x1xi32>
    %24 = arith.cmpi eq, %3, %23 : vector<16x1xi32>
    %25 = arith.extui %24 : vector<16x1xi1> to vector<16x1xi32>
    %26 = arith.sitofp %25 : vector<16x1xi32> to vector<16x1xf32>
    %c2 = arith.constant 2 : index
    %c0_9 = arith.constant 0 : index
    %27 = vector.load %arg3[%c2, %c0_9] : memref<10x256xf32, #tpu.memory_space<vmem>>, vector<1x256xf32>
    %28 = vector.broadcast %26 : vector<16x1xf32> to vector<16x256xf32>
    %29 = vector.broadcast %27 : vector<1x256xf32> to vector<16x256xf32>
    %30 = arith.mulf %28, %29 : vector<16x256xf32>
    %31 = arith.addf %22, %30 : vector<16x256xf32>
    %c3_i32 = arith.constant 3 : i32
    %32 = vector.broadcast %c3_i32 : i32 to vector<16x1xi32>
    %33 = arith.cmpi eq, %3, %32 : vector<16x1xi32>
    %34 = arith.extui %33 : vector<16x1xi1> to vector<16x1xi32>
    %35 = arith.sitofp %34 : vector<16x1xi32> to vector<16x1xf32>
    %c3 = arith.constant 3 : index
    %c0_10 = arith.constant 0 : index
    %36 = vector.load %arg3[%c3, %c0_10] : memref<10x256xf32, #tpu.memory_space<vmem>>, vector<1x256xf32>
    %37 = vector.broadcast %35 : vector<16x1xf32> to vector<16x256xf32>
    %38 = vector.broadcast %36 : vector<1x256xf32> to vector<16x256xf32>
    %39 = arith.mulf %37, %38 : vector<16x256xf32>
    %40 = arith.addf %31, %39 : vector<16x256xf32>
    %c4_i32 = arith.constant 4 : i32
    %41 = vector.broadcast %c4_i32 : i32 to vector<16x1xi32>
    %42 = arith.cmpi eq, %3, %41 : vector<16x1xi32>
    %43 = arith.extui %42 : vector<16x1xi1> to vector<16x1xi32>
    %44 = arith.sitofp %43 : vector<16x1xi32> to vector<16x1xf32>
    %c4 = arith.constant 4 : index
    %c0_11 = arith.constant 0 : index
    %45 = vector.load %arg3[%c4, %c0_11] : memref<10x256xf32, #tpu.memory_space<vmem>>, vector<1x256xf32>
    %46 = vector.broadcast %44 : vector<16x1xf32> to vector<16x256xf32>
    %47 = vector.broadcast %45 : vector<1x256xf32> to vector<16x256xf32>
    %48 = arith.mulf %46, %47 : vector<16x256xf32>
    %49 = arith.addf %40, %48 : vector<16x256xf32>
    %c5_i32 = arith.constant 5 : i32
    %50 = vector.broadcast %c5_i32 : i32 to vector<16x1xi32>
    %51 = arith.cmpi eq, %3, %50 : vector<16x1xi32>
    %52 = arith.extui %51 : vector<16x1xi1> to vector<16x1xi32>
    %53 = arith.sitofp %52 : vector<16x1xi32> to vector<16x1xf32>
    %c5 = arith.constant 5 : index
    %c0_12 = arith.constant 0 : index
    %54 = vector.load %arg3[%c5, %c0_12] : memref<10x256xf32, #tpu.memory_space<vmem>>, vector<1x256xf32>
    %55 = vector.broadcast %53 : vector<16x1xf32> to vector<16x256xf32>
    %56 = vector.broadcast %54 : vector<1x256xf32> to vector<16x256xf32>
    %57 = arith.mulf %55, %56 : vector<16x256xf32>
    %58 = arith.addf %49, %57 : vector<16x256xf32>
    %c6_i32 = arith.constant 6 : i32
    %59 = vector.broadcast %c6_i32 : i32 to vector<16x1xi32>
    %60 = arith.cmpi eq, %3, %59 : vector<16x1xi32>
    %61 = arith.extui %60 : vector<16x1xi1> to vector<16x1xi32>
    %62 = arith.sitofp %61 : vector<16x1xi32> to vector<16x1xf32>
    %c6 = arith.constant 6 : index
    %c0_13 = arith.constant 0 : index
    %63 = vector.load %arg3[%c6, %c0_13] : memref<10x256xf32, #tpu.memory_space<vmem>>, vector<1x256xf32>
    %64 = vector.broadcast %62 : vector<16x1xf32> to vector<16x256xf32>
    %65 = vector.broadcast %63 : vector<1x256xf32> to vector<16x256xf32>
    %66 = arith.mulf %64, %65 : vector<16x256xf32>
    %67 = arith.addf %58, %66 : vector<16x256xf32>
    %c7_i32 = arith.constant 7 : i32
    %68 = vector.broadcast %c7_i32 : i32 to vector<16x1xi32>
    %69 = arith.cmpi eq, %3, %68 : vector<16x1xi32>
    %70 = arith.extui %69 : vector<16x1xi1> to vector<16x1xi32>
    %71 = arith.sitofp %70 : vector<16x1xi32> to vector<16x1xf32>
    %c7 = arith.constant 7 : index
    %c0_14 = arith.constant 0 : index
    %72 = vector.load %arg3[%c7, %c0_14] : memref<10x256xf32, #tpu.memory_space<vmem>>, vector<1x256xf32>
    %73 = vector.broadcast %71 : vector<16x1xf32> to vector<16x256xf32>
    %74 = vector.broadcast %72 : vector<1x256xf32> to vector<16x256xf32>
    %75 = arith.mulf %73, %74 : vector<16x256xf32>
    %76 = arith.addf %67, %75 : vector<16x256xf32>
    %c8_i32 = arith.constant 8 : i32
    %77 = vector.broadcast %c8_i32 : i32 to vector<16x1xi32>
    %78 = arith.cmpi eq, %3, %77 : vector<16x1xi32>
    %79 = arith.extui %78 : vector<16x1xi1> to vector<16x1xi32>
    %80 = arith.sitofp %79 : vector<16x1xi32> to vector<16x1xf32>
    %c8 = arith.constant 8 : index
    %c0_15 = arith.constant 0 : index
    %81 = vector.load %arg3[%c8, %c0_15] : memref<10x256xf32, #tpu.memory_space<vmem>>, vector<1x256xf32>
    %82 = vector.broadcast %80 : vector<16x1xf32> to vector<16x256xf32>
    %83 = vector.broadcast %81 : vector<1x256xf32> to vector<16x256xf32>
    %84 = arith.mulf %82, %83 : vector<16x256xf32>
    %85 = arith.addf %76, %84 : vector<16x256xf32>
    %c9_i32 = arith.constant 9 : i32
    %86 = vector.broadcast %c9_i32 : i32 to vector<16x1xi32>
    %87 = arith.cmpi eq, %3, %86 : vector<16x1xi32>
    %88 = arith.extui %87 : vector<16x1xi1> to vector<16x1xi32>
    %89 = arith.sitofp %88 : vector<16x1xi32> to vector<16x1xf32>
    %c9 = arith.constant 9 : index
    %c0_16 = arith.constant 0 : index
    %90 = vector.load %arg3[%c9, %c0_16] : memref<10x256xf32, #tpu.memory_space<vmem>>, vector<1x256xf32>
    %91 = vector.broadcast %89 : vector<16x1xf32> to vector<16x256xf32>
    %92 = vector.broadcast %90 : vector<1x256xf32> to vector<16x256xf32>
    %93 = arith.mulf %91, %92 : vector<16x256xf32>
    %94 = arith.addf %85, %93 : vector<16x256xf32>
    %95 = arith.addf %2, %94 : vector<16x256xf32>
    %cst_17 = arith.constant 0.000000e+00 : f32
    %96 = vector.broadcast %cst_17 : f32 to vector<16x256xf32>
    %97 = arith.cmpf ogt, %95, %96 : vector<16x256xf32>
    %cst_18 = arith.constant 2.000000e-01 : f32
    %98 = vector.broadcast %cst_18 : f32 to vector<16x256xf32>
    %99 = arith.mulf %98, %95 : vector<16x256xf32>
    %100 = arith.select %97, %95, %99 : vector<16x256xi1>, vector<16x256xf32>
    %101 = arith.truncf %100 : vector<16x256xf32> to vector<16x256xbf16>
    %c0_19 = arith.constant 0 : index
    %c0_20 = arith.constant 0 : index
    %102 = vector.load %arg5[%c0_19, %c0_20] : memref<256x512xbf16, #tpu.memory_space<vmem>>, vector<256x512xbf16>
    %cst_21 = arith.constant dense<0.000000e+00> : vector<16x512xf32>
    %103 = tpu.matmul %101, %102, %cst_21 {dimension_numbers = #tpu.dot_dimension_numbers<[1], [0], [0], [1], [0, 0, 1, 1], [], []>} : vector<16x256xbf16>, vector<256x512xbf16>, vector<16x512xf32> -> vector<16x512xf32>
    %c0_22 = arith.constant 0 : index
    %c0_23 = arith.constant 0 : index
    %104 = vector.load %arg6[%c0_22, %c0_23] : memref<1x512xf32, #tpu.memory_space<vmem>>, vector<1x512xf32>
    %105 = vector.broadcast %104 : vector<1x512xf32> to vector<16x512xf32>
    %106 = arith.addf %103, %105 : vector<16x512xf32>
    %cst_24 = arith.constant 0.000000e+00 : f32
    %107 = vector.broadcast %cst_24 : f32 to vector<16x512xf32>
    %108 = arith.cmpf ogt, %106, %107 : vector<16x512xf32>
    %cst_25 = arith.constant 2.000000e-01 : f32
    %109 = vector.broadcast %cst_25 : f32 to vector<16x512xf32>
    %110 = arith.mulf %109, %106 : vector<16x512xf32>
    %111 = arith.select %108, %106, %110 : vector<16x512xi1>, vector<16x512xf32>
    %112 = arith.truncf %111 : vector<16x512xf32> to vector<16x512xbf16>
    %c0_26 = arith.constant 0 : index
    %c0_27 = arith.constant 0 : index
    %113 = vector.load %arg7[%c0_26, %c0_27] : memref<512x784xbf16, #tpu.memory_space<vmem>>, vector<512x784xbf16>
    %cst_28 = arith.constant dense<0.000000e+00> : vector<16x784xf32>
    %114 = tpu.matmul %112, %113, %cst_28 {dimension_numbers = #tpu.dot_dimension_numbers<[1], [0], [0], [1], [0, 0, 1, 1], [], []>} : vector<16x512xbf16>, vector<512x784xbf16>, vector<16x784xf32> -> vector<16x784xf32>
    %c0_29 = arith.constant 0 : index
    %c0_30 = arith.constant 0 : index
    %115 = vector.load %arg8[%c0_29, %c0_30] : memref<1x784xf32, #tpu.memory_space<vmem>>, vector<1x784xf32>
    %116 = vector.broadcast %115 : vector<1x784xf32> to vector<16x784xf32>
    %117 = arith.addf %114, %116 : vector<16x784xf32>
    %118 = math.tanh %117 : vector<16x784xf32>
    %c0_31 = arith.constant 0 : index
    %c0_32 = arith.constant 0 : index
    %119 = vector.load %arg9[%c0_31, %c0_32] : memref<16x784xf32, #tpu.memory_space<vmem>>, vector<16x784xf32>
    tpu.vector_store %arg9[%c0_31, %c0_32], %118 {strides = array<i32>} : memref<16x784xf32, #tpu.memory_space<vmem>>, vector<16x784xf32>,
    return
  }
  func.func @transform_0(%arg0: i32) -> (i32, i32) {
    %c0_i32 = arith.constant 0 : i32
    %c0_i32_0 = arith.constant 0 : i32
    return %arg0, %c0_i32 : i32, i32
  }
  func.func @transform_1(%arg0: i32) -> (i32, i32) {
    %c0_i32 = arith.constant 0 : i32
    %c0_i32_0 = arith.constant 0 : i32
    return %arg0, %c0_i32 : i32, i32
  }
  func.func @transform_2(%arg0: i32) -> (i32, i32) {
    %c0_i32 = arith.constant 0 : i32
    %c0_i32_0 = arith.constant 0 : i32
    %c0_i32_1 = arith.constant 0 : i32
    return %c0_i32, %c0_i32_0 : i32, i32
  }
  func.func @transform_3(%arg0: i32) -> (i32, i32) {
    %c0_i32 = arith.constant 0 : i32
    %c0_i32_0 = arith.constant 0 : i32
    %c0_i32_1 = arith.constant 0 : i32
    return %c0_i32, %c0_i32_0 : i32, i32
  }
  func.func @transform_4(%arg0: i32) -> (i32, i32) {
    %c0_i32 = arith.constant 0 : i32
    %c0_i32_0 = arith.constant 0 : i32
    %c0_i32_1 = arith.constant 0 : i32
    return %c0_i32, %c0_i32_0 : i32, i32
  }
  func.func @transform_5(%arg0: i32) -> (i32, i32) {
    %c0_i32 = arith.constant 0 : i32
    %c0_i32_0 = arith.constant 0 : i32
    %c0_i32_1 = arith.constant 0 : i32
    return %c0_i32, %c0_i32_0 : i32, i32
  }
  func.func @transform_6(%arg0: i32) -> (i32, i32) {
    %c0_i32 = arith.constant 0 : i32
    %c0_i32_0 = arith.constant 0 : i32
    %c0_i32_1 = arith.constant 0 : i32
    return %c0_i32, %c0_i32_0 : i32, i32
  }
  func.func @transform_7(%arg0: i32) -> (i32, i32) {
    %c0_i32 = arith.constant 0 : i32
    %c0_i32_0 = arith.constant 0 : i32
    %c0_i32_1 = arith.constant 0 : i32
    return %c0_i32, %c0_i32_0 : i32, i32
  }
  func.func @transform_8(%arg0: i32) -> (i32, i32) {
    %c0_i32 = arith.constant 0 : i32
    %c0_i32_0 = arith.constant 0 : i32
    return %arg0, %c0_i32 : i32, i32
  }
}

</mosaic_0001>

<bundles_post_ra>
// kernel: generator_forward.1
= control target key start
LH: loop header
LB: loop body
LE: loop exit
PB: predicated region body
PF: predicated region fallthrough
CT: control target
= control target key end

     0   :  { %13 = vsyncpa [#allocation3], 0  ;;  %s7259_s0 = inlined_call_operand.vmem [shape: bf16[64,100], index: 0, kind: input, shape index: {}]   ;;  %s7260_s1 = inlined_call_operand.vmem [shape: s32[64,1], index: 1, kind: input, shape index: {}]   ;;  %s7261_s2 = inlined_call_operand.vmem [shape: f32[10,256], index: 2, kind: input, shape index: {}]   ;;  %s7262_s3 = inlined_call_operand.vmem [shape: bf16[100,256], index: 3, kind: input, shape index: {}]   ;;  %s7263_s4 = inlined_call_operand.vmem [shape: bf16[256,512], index: 4, kind: input, shape index: {}]   ;;  %s7264_s5 = inlined_call_operand.vmem [shape: f32[1,512], index: 5, kind: input, shape index: {}]   ;;  %s7265_s6 = inlined_call_operand.vmem [shape: bf16[512,784], index: 6, kind: input, shape index: {}]   ;;  %s7266_s7 = inlined_call_operand.vmem [shape: f32[1,784], index: 7, kind: input, shape index: {}]   ;;  %s7267_s8 = inlined_call_operand.hbm [shape: f32[64,784], index: 8, kind: output, shape index: {}]  }
   0x1   :  { %15 = vsyncpa [#allocation3 + $0x1], 0  ;;  %s5037_s27 = smov 0   ;;  %s5039_s28 = smov 0  }
   0x2   :  { %s5041_s29 = smov 0   ;;  %s5043_s30 = smov 0  }
   0x3 LB: > { %s5058_s9 = sadd.s32 4294967295, %s4986_s30   ;;  %s3249_s10 = sadd.s32 4294967294, %s4986_s30   ;;  %s4986_s30 = sphi %s5043_s30, %s7273_s30   ;;  %s4982_s29 = sphi %s5041_s29, %s7272_s29   ;;  %s4978_s28 = sphi %s5039_s28, %s7271_s28   ;;  %s4974_s27 = sphi %s5037_s27, %s7270_s27  }
   0x4   : > { %s5062_s11 = sadd.s32 1, %s4986_s30   ;;  %s206_s12 = sadd.s32 1, %s4982_s29 }
   0x5   : > { %s203_s13 = ssub.s32 %s4986_s30, %s5062_s11  ;;  %p216_p0 = scmp.ne.s32.totalorder %s4982_s29, %s4978_s28 }
   0x6   : > { %p204_p1 = scmp.eq.s32.totalorder %s203_s13, 0  ;;  %p217_p2 = scmp.eq.s32.totalorder %s5058_s9, 3 }
   0x7   : > { %p222_p3 = scmp.ne.s32.totalorder %s4978_s28, %s4974_s27  ;;  %p223_p4 = scmp.eq.s32.totalorder %s3249_s10, 3 }
   0x8   : > { %s5073_s14 = scalar_select %p204_p1, %s4982_s29, %s206_s12  }
   0x9   : > { %p5075_p5 = por %p217_p2, %p216_p0  ;;  %p5079_p6 = por %p223_p4, %p222_p3 }
   0xa   : > { %p3252_p7 = scmp.ge.s32.totalorder %s4986_s30, 1  ;;  %p277_p8 = scmp.lt.s32.totalorder %s4986_s30, 5 }
   0xc   : > { %p278_p9 = pnand %p3252_p7, %p277_p8 }
   0xd   : > { %s3253_s23 = sshll.u32 (!%p278_p9), %s5058_s9, 1  ;;  %s313_s18 = sand.u32 (!%p278_p9), 1, %s4978_s28  }
   0xe   : > { %281 = sbr.rel (%p278_p9) target bundleno = 668 (0x29c), region = 52  ;;  %p317_p10 = scmp.lt.s32.totalorder (!%p278_p9), %s3253_s23, 7 }
   0xf   : > { %s4944_s25 = scalar_lea.hbm (!%p278_p9), %s7267_s8, 448 }
  0x13   : > { %v344_v0 = vld [vmem:[%s7262_s3 + $0x60] sm:$0x33]  ;;  %v4988_v3 = vmov 0   ;;  %vm730_vm0 = vcmask 1041408   ;;  %v3332_v4 = vld [vmem:[%s7262_s3 + $0x50] sm:$0xf] }
  0x14   : > { %v698_v1 = vunpack.c.l.b16 %v344_v0  ;;  %v699_v2 = vunpack.c.h.b16 %v344_v0  ;;  %4854 = vset.pattern.permute.xlu1 %v4988_v3  ;;  %4843 = vset.pattern.permute.xlu0 %v4988_v3  ;;  %v4509_v5 = vld [vmem:[%s7262_s3 + $0x54] sm:$0xf0]  ;;  %v4508_v8 = vld [vmem:[%s7262_s3 + $0x54] sm:$0xf]  ;;  %v3334_v9 = vld [vmem:[%s7262_s3 + $0x58] sm:$0xf0] }
  0x15   : > { %4865 = vset.pattern.permute.xlu2 %v4988_v3  ;;  %s7275_s23 = smov (!%p317_p10, %s3253_s23), 7  ;;  %v3324_v12 = vld [vmem:[%s7262_s3 + $0x40] sm:$0xf]  ;;  %v3333_v13 = vor.u32 %v4509_v5, %v3332_v4  ;;  %v3337_v14 = vor.u32 %v4508_v8, %v3334_v9  ;;  %v4507_v15 = vld [vmem:[%s7262_s3 + $0x44] sm:$0xf0]  ;;  %v4989_v25 = vmov 0.0  }
  0x16   : > { %v712_v6 = vpack.c.b16 %v698_v1, %v698_v1  ;;  %v713_v7 = vpack.c.b16 %v699_v2, %v699_v2  ;;  %v4506_v16 = vld [vmem:[%s7262_s3 + $0x44] sm:$0xf]  ;;  %v3326_v17 = vld [vmem:[%s7262_s3 + $0x48] sm:$0xf0]  ;;  %s3256_s24 = sshll.u32 %s7275_s23, 3  ;;  %v3325_v20 = vor.u32 %v4507_v15, %v3324_v12  ;;  %s3254_s12 = sshll.u32 %s7275_s23, 2 }
  0x17   : > { %s326_s10 = scalar_lea.vmem %s7260_s1, %s3256_s24  ;;  %v3329_v21 = vor.u32 %v4506_v16, %v3326_v17  ;;  %v3316_v22 = vld [vmem:[%s7262_s3 + $0x30] sm:$0xf]  ;;  %v4505_v23 = vld [vmem:[%s7262_s3 + $0x34] sm:$0xf0]  ;;  %v4504_v24 = vld [vmem:[%s7262_s3 + $0x34] sm:$0xf]  ;;  %s320_s26 = scalar_lea.vmem %s7259_s0, %s3254_s12 }
  0x18   : > { %v732_v10 = vsel %vm730_vm0, %v712_v6, 0  ;;  %v735_v11 = vsel %vm730_vm0, %v713_v7, 0  ;;  %v5119_v18 = vld [vmem:[%s326_s10] sm:$0xff]  ;;  %v5121_v19 = vld [vmem:[%s326_s10 + $0x8] sm:$0xff]  ;;  %v3318_v30 = vld [vmem:[%s7262_s3 + $0x38] sm:$0xf0]  ;;  %v3317_v33 = vor.u32 %v4505_v23, %v3316_v22 }
  0x19   : > { %738 = vmatpush.bf16.msra.mxu0 %v732_v10  ;;  %752 = vmatpush.bf16.msra.mxu1 %v735_v11  ;;  %vm408_vm1 = vcmp.eq.s32.totalorder %v5119_v18, 2  ;;  %vm409_vm2 = vcmp.eq.s32.totalorder %v5121_v19, 2  ;;  %vm347_vm3 = vcmp.eq.s32.totalorder %v5119_v18, 0  ;;  %vm348_vm4 = vcmp.eq.s32.totalorder %v5121_v19, 0  ;;  %v3308_v39 = vld [vmem:[%s7262_s3 + $0x20] sm:$0xf] }
  0x1a   : > { %v3262_v26 = vsel %vm408_vm1, 1.0, %v4989_v25  ;;  %v3263_v27 = vsel %vm409_vm2, 1.0, %v4989_v25  ;;  %v3257_v28 = vsel %vm347_vm3, 1.0, %v4989_v25  ;;  %v3258_v29 = vsel %vm348_vm4, 1.0, %v4989_v25  ;;  %v4503_v40 = vld [vmem:[%s7262_s3 + $0x24] sm:$0xf0] }
  0x1b   : > { %v4855_v31 = vpack.i.bf16 %v3263_v27, %v3262_v26  ;;  %v4844_v32 = vpack.i.bf16 %v3258_v29, %v3257_v28  ;;  %vm439_vm5 = vcmp.eq.s32.totalorder %v5119_v18, 3  ;;  %vm440_vm6 = vcmp.eq.s32.totalorder %v5121_v19, 3  ;;  %v4502_v41 = vld [vmem:[%s7262_s3 + $0x24] sm:$0xf]  ;;  %v3310_v42 = vld [vmem:[%s7262_s3 + $0x28] sm:$0xf0] }
  0x1c   : > { %vm377_vm7 = vcmp.eq.s32.totalorder %v5119_v18, 1  ;;  %vm378_vm8 = vcmp.eq.s32.totalorder %v5121_v19, 1  ;;  %v3321_v34 = vor.u32 %v4504_v24, %v3318_v30  ;;  %v3265_v35 = vsel %vm439_vm5, 1.0, %v4989_v25  ;;  %v3300_v45 = vld [vmem:[%s7262_s3 + $0x10] sm:$0xf]  ;;  %v4497_v7 = vld [vmem:[%s320_s26] sm:$0xff] }
  0x1d   : > { %739 = vmatpush.bf16.msra.mxu0 %v3333_v13  ;;  %753 = vmatpush.bf16.msra.mxu1 %v3337_v14  ;;  %v3266_v36 = vsel %vm440_vm6, 1.0, %v4989_v25  ;;  %v3259_v37 = vsel %vm377_vm7, 1.0, %v4989_v25  ;;  %v3260_v38 = vsel %vm378_vm8, 1.0, %v4989_v25  ;;  %vm470_vm9 = vcmp.eq.s32.totalorder %v5119_v18, 4  ;;  %v4501_v46 = vld [vmem:[%s7262_s3 + $0x14] sm:$0xf0] }
  0x1e   : > { %4856 = vperm.xlu1 %4854, %v4855_v31   ;;  %4845 = vperm.xlu0 %4843, %v4844_v32   ;;  %v4860_v43 = vpack.i.bf16 %v3266_v36, %v3265_v35  ;;  %v4849_v44 = vpack.i.bf16 %v3260_v38, %v3259_v37  ;;  %vm471_vm10 = vcmp.eq.s32.totalorder %v5121_v19, 4  ;;  %v3268_v47 = vsel %vm470_vm9, 1.0, %v4989_v25  ;;  %v4500_v50 = vld [vmem:[%s7262_s3 + $0x14] sm:$0xf]  ;;  %v3302_v51 = vld [vmem:[%s7262_s3 + $0x18] sm:$0xf0] }
  0x1f   : > { %v3309_v48 = vor.u32 %v4503_v40, %v3308_v39  ;;  %v3313_v49 = vor.u32 %v4502_v41, %v3310_v42  ;;  %vm563_vm11 = vcmp.eq.s32.totalorder %v5119_v18, 7  ;;  %v3269_v52 = vsel %vm471_vm10, 1.0, %v4989_v25  ;;  %v3292_v60 = vld [vmem:[%s7262_s3] sm:$0xf]  ;;  %v4499_v61 = vld [vmem:[%s7262_s3 + $0x4] sm:$0xf0] }
  0x20   : > { %vm564_vm12 = vcmp.eq.s32.totalorder %v5121_v19, 7  ;;  %vm532_vm13 = vcmp.eq.s32.totalorder %v5119_v18, 6  ;;  %vm533_vm14 = vcmp.eq.s32.totalorder %v5121_v19, 6  ;;  %v4866_v53 = vpack.i.bf16 %v3269_v52, %v3268_v47  ;;  %v4498_v62 = vld [vmem:[%s7262_s3 + $0x4] sm:$0xf]  ;;  %s4798_s10 = smul.u32 112, %s313_s18 }
  0x21   : > { %740 = vmatpush.bf16.msra.mxu0 %v3325_v20  ;;  %754 = vmatpush.bf16.msra.mxu1 %v3329_v21  ;;  %v3301_v54 = vor.u32 %v4501_v46, %v3300_v45  ;;  %v3305_v55 = vor.u32 %v4500_v50, %v3302_v51  ;;  %vm501_vm15 = vcmp.eq.s32.totalorder %v5119_v18, 5  ;;  %vm502_vm0 = vcmp.eq.s32.totalorder %v5121_v19, 5  ;;  %v3294_v63 = vld [vmem:[%s7262_s3 + $0x8] sm:$0xf0]  ;;  %v3454_v14 = vld [vmem:[%s7263_s4 + $0xe0] sm:$0xf] }
  0x22   : > { %v3277_v56 = vsel %vm563_vm11, 1.0, %v4989_v25  ;;  %v3278_v57 = vsel %vm564_vm12, 1.0, %v4989_v25  ;;  %v3274_v58 = vsel %vm532_vm13, 1.0, %v4989_v25  ;;  %v3275_v59 = vsel %vm533_vm14, 1.0, %v4989_v25  ;;  %4867 = vperm.xlu2 %4865, %v4866_v53   ;;  %v4540_v15 = vld [vmem:[%s7263_s4 + $0xec] sm:$0xf0] }
  0x23   : > { %v3271_v0 = vsel %vm501_vm15, 1.0, %v4989_v25  ;;  %v3272_v1 = vsel %vm502_vm0, 1.0, %v4989_v25  ;;  %v4881_v2 = vpack.i.bf16 %v3278_v57, %v3277_v56  ;;  %v4876_v3 = vpack.i.bf16 %v3275_v59, %v3274_v58  ;;  %v3582_v16 = vld [vmem:[%s7263_s4 + $0x1e0] sm:$0xf]  ;;  %v3456_v20 = vld [vmem:[%s7263_s4 + $0xf0] sm:$0xf0] }
  0x24   : > { %v3293_v4 = vor.u32 %v4499_v61, %v3292_v60  ;;  %v3297_v5 = vor.u32 %v4498_v62, %v3294_v63  ;;  %vm625_vm1 = vcmp.eq.s32.totalorder %v5119_v18, 9  ;;  %vm626_vm2 = vcmp.eq.s32.totalorder %v5121_v19, 9  ;;  %v4570_v23 = vld [vmem:[%s7263_s4 + $0x1e4] sm:$0xf]  ;;  %v3584_v24 = vld [vmem:[%s7263_s4 + $0x1f0] sm:$0xf0] }
  0x25   : > { %741 = vmatpush.bf16.msra.mxu0 %v3317_v33  ;;  %755 = vmatpush.bf16.msra.mxu1 %v3321_v34  ;;  %v4871_v6 = vpack.i.bf16 %v3272_v1, %v3271_v0  ;;  %vm594_vm3 = vcmp.eq.s32.totalorder %v5119_v18, 8  ;;  %vm595_vm4 = vcmp.eq.s32.totalorder %v5121_v19, 8  ;;  %vm726_vm5 = vcmask 818176   ;;  %v4572_v18 = vld [vmem:[%s7263_s4 + $0x1ec] sm:$0xf0]  ;;  %s7196_s20 = scalar_lea.vmem [#allocation2], %s4798_s10 }
  0x26   : > { %4861 = vperm.xlu1 %4854, %v4860_v43   ;;  %4850 = vperm.xlu0 %4843, %v4849_v44   ;;  %v3283_v8 = vsel %vm625_vm1, 1.0, %v4989_v25  ;;  %v3284_v9 = vsel %vm626_vm2, 1.0, %v4989_v25  ;;  %v3280_v10 = vsel %vm594_vm3, 1.0, %v4989_v25  ;;  %v3281_v11 = vsel %vm595_vm4, 1.0, %v4989_v25  ;;  %v4538_v19 = vld [vmem:[%s7263_s4 + $0xe4] sm:$0xf] }
  0x27   : > { %v4891_v12 = vpack.i.bf16 %v3284_v9, %v3283_v8  ;;  %v4886_v13 = vpack.i.bf16 %v3281_v11, %v3280_v10  ;;  %v3455_v17 = vor.u32 %v4540_v15, %v3454_v14  ;;  %v3583_v21 = vor.u32 %v4572_v18, %v3582_v16  ;;  %v3438_v25 = vld [vmem:[%s7263_s4 + $0xc0] sm:$0xf]  ;;  %v4536_v27 = vld [vmem:[%s7263_s4 + $0xcc] sm:$0xf0]  ;;  %v4534_v32 = vld [vmem:[%s7263_s4 + $0xc4] sm:$0xf] }
  0x28   : > { %v3459_v22 = vor.u32 %v4538_v19, %v3456_v20  ;;  %v3587_v26 = vor.u32 %v4570_v23, %v3584_v24  ;;  %v3566_v28 = vld [vmem:[%s7263_s4 + $0x1c0] sm:$0xf]  ;;  %v4568_v29 = vld [vmem:[%s7263_s4 + $0x1cc] sm:$0xf0]  ;;  %v3439_v30 = vor.u32 %v4536_v27, %v3438_v25  ;;  %v3440_v33 = vld [vmem:[%s7263_s4 + $0xd0] sm:$0xf0] }
  0x29   : > { %742 = vmatpush.bf16.msra.mxu0 %v3309_v48  ;;  %756 = vmatpush.bf16.msra.mxu1 %v3313_v49  ;;  %v3567_v31 = vor.u32 %v4568_v29, %v3566_v28  ;;  %v4566_v34 = vld [vmem:[%s7263_s4 + $0x1c4] sm:$0xf]  ;;  %v3443_v35 = vor.u32 %v4534_v32, %v3440_v33  ;;  %v3568_v36 = vld [vmem:[%s7263_s4 + $0x1d0] sm:$0xf0]  ;;  %v3422_v38 = vld [vmem:[%s7263_s4 + $0xa0] sm:$0xf] }
  0x2a   : > { %4872 = vperm.xlu2 %4865, %v4871_v6   ;;  %1173 = vmatpush.bf16.msra.mxu2 %v3455_v17  ;;  %v3571_v37 = vor.u32 %v4566_v34, %v3568_v36  ;;  %v4532_v39 = vld [vmem:[%s7263_s4 + $0xac] sm:$0xf0]  ;;  %v3550_v41 = vld [vmem:[%s7263_s4 + $0x1a0] sm:$0xf]  ;;  %v4530_v43 = vld [vmem:[%s7263_s4 + $0xa4] sm:$0xf] }
  0x2b   : > { %1187 = vmatpush.bf16.msra.mxu3 %v3583_v21  ;;  %v3423_v40 = vor.u32 %v4532_v39, %v3422_v38  ;;  %v4564_v42 = vld [vmem:[%s7263_s4 + $0x1ac] sm:$0xf0]  ;;  %v3424_v45 = vld [vmem:[%s7263_s4 + $0xb0] sm:$0xf0]  ;;  %v4562_v46 = vld [vmem:[%s7263_s4 + $0x1a4] sm:$0xf] }
  0x2c   : > { %v3551_v44 = vor.u32 %v4564_v42, %v3550_v41  ;;  %v3552_v47 = vld [vmem:[%s7263_s4 + $0x1b0] sm:$0xf0]  ;;  %v5290_v48 = vld [vmem:[%s7261_s2 + $0x4] ss:$8 sm:$0x3]  ;;  %v3427_v50 = vor.u32 %v4530_v43, %v3424_v45  ;;  %s4799_s10 = smul.u32 112, %s5058_s9 }
  0x2d   : > { %743 = vmatpush.bf16.msra.mxu0 %v3301_v54  ;;  %757 = vmatpush.bf16.msra.mxu1 %v3305_v55  ;;  %v5295_v49 = vld [vmem:[%s7261_s2 + $0x2] ss:$8 sm:$0x3]  ;;  %v3555_v51 = vor.u32 %v4562_v46, %v3552_v47  ;;  %v5300_v52 = vld [vmem:[%s7261_s2] ss:$8 sm:$0x3] }
  0x2e   : > { %4882 = vperm.xlu1 %4854, %v4881_v2   ;;  %4877 = vperm.xlu0 %4843, %v4876_v3   ;;  %v5305_v53 = vld [vmem:[%s7261_s2 + $0x5] ss:$8 sm:$0x3]  ;;  %v3406_v54 = vld [vmem:[%s7263_s4 + $0x80] sm:$0xf]  ;;  %v489_v3 = vperm.slane %v5290_v48, 0  ;;  %s3171_s13 = scalar_lea.hbm %s7267_s8, %s4799_s10 }
  0x2f   : > { %1174 = vmatpush.bf16.msra.mxu2 %v3439_v30  ;;  %1188 = vmatpush.bf16.msra.mxu3 %v3567_v31  ;;  %v4528_v55 = vld [vmem:[%s7263_s4 + $0x8c] sm:$0xf0]  ;;  %v3534_v56 = vld [vmem:[%s7263_s4 + $0x180] sm:$0xf]  ;;  %v4526_v59 = vld [vmem:[%s7263_s4 + $0x84] sm:$0xf] }
  0x30   : > { %v3407_v57 = vor.u32 %v4528_v55, %v3406_v54  ;;  %v4560_v58 = vld [vmem:[%s7263_s4 + $0x18c] sm:$0xf0]  ;;  %v3408_v60 = vld [vmem:[%s7263_s4 + $0x90] sm:$0xf0]  ;;  %v4558_v63 = vld [vmem:[%s7263_s4 + $0x184] sm:$0xf] }
  0x31   : > { %744 = vmatpush.bf16.msra.mxu0 %v3293_v4  ;;  %758 = vmatpush.bf16.msra.mxu1 %v3297_v5  ;;  %v3535_v61 = vor.u32 %v4560_v58, %v3534_v56  ;;  %v3411_v62 = vor.u32 %v4526_v59, %v3408_v60  ;;  %v3536_v0 = vld [vmem:[%s7263_s4 + $0x190] sm:$0xf0]  ;;  %v5334_v1 = vld [vmem:[%s7261_s2 + $0x3] ss:$8 sm:$0x3]  ;;  %v490_v4 = vperm.slane %v5290_v48, 1 }
  0x32   : > { %4887 = vperm.xlu2 %4865, %v4886_v13   ;;  %v3539_v2 = vor.u32 %v4558_v63, %v3536_v0  ;;  %v427_v5 = vperm.slane %v5295_v49, 0  ;;  %v428_v6 = vperm.slane %v5295_v49, 1  ;;  %v366_v8 = vperm.slane %v5300_v52, 1  ;;  %v3390_v10 = vld [vmem:[%s7263_s4 + $0x60] sm:$0xf]  ;;  %s3172_s17 = sshll.u32 %s7196_s20, 4  ;;  %s3173_s17 = int_to_ptr.vmem [resolvable:$true] %s3172_s17 }
  0x33   : > { %1175 = vmatpush.bf16.msra.mxu2 %v3423_v40  ;;  %1189 = vmatpush.bf16.msra.mxu3 %v3551_v44  ;;  %v520_v9 = vperm.slane %v5305_v53, 0  ;;  %v521_v11 = vperm.slane %v5305_v53, 1  ;;  %v5351_v13 = vld [vmem:[%s7261_s2 + $0x1] ss:$8 sm:$0x3]  ;;  %vm3149_vm2 = vcmask 130048  }
  0x34   : > { %3338 = vmatmul.msk.bf16.vlgmr.msra.gmra.mxu0 %vm726_vm5, %v4497_v7  ;;  %3339 = vmatmul.msk.bf16.vlgmr.msra.gmra.mxu1 %vm726_vm5, %v4497_v7  ;;  %v365_v7 = vperm.slane %v5300_v52, 0  ;;  %v4524_v14 = vld [vmem:[%s7263_s4 + $0x6c] sm:$0xf0]  ;;  %v3518_v15 = vld [vmem:[%s7263_s4 + $0x160] sm:$0xf]  ;;  %v397_v38 = vperm.slane %v5351_v13, 1 }
  0x35   : > { %1201 = vmatpush.bf16.msrb.mxu0 %v3459_v22  ;;  %1215 = vmatpush.bf16.msrb.mxu1 %v3587_v26  ;;  %v5364_v17 = vld [vmem:[%s7261_s2 + $0x10] ss:$8 sm:$0x3]  ;;  %v5369_v18 = vld [vmem:[%s7261_s2 + $0x7] ss:$8 sm:$0x3]  ;;  %v3391_v24 = vor.u32 %v4524_v14, %v3390_v10 }
  0x36   : > { %4892 = vperm.xlu0 %4843, %v4891_v12   ;;  %v458_v12 = vperm.slane %v5334_v1, 0  ;;  %v4556_v19 = vld [vmem:[%s7263_s4 + $0x16c] sm:$0xf0]  ;;  %v4522_v20 = vld [vmem:[%s7263_s4 + $0x64] sm:$0xf]  ;;  %v459_v22 = vperm.slane %v5334_v1, 1 }
  0x37   : > { %1176 = vmatpush.bf16.msra.mxu2 %v3407_v57  ;;  %1190 = vmatpush.bf16.msra.mxu3 %v3535_v61  ;;  %v3392_v21 = vld [vmem:[%s7263_s4 + $0x70] sm:$0xf0]  ;;  %v5384_v23 = vld [vmem:[%s7261_s2 + $0x6] ss:$8 sm:$0x3]  ;;  %v3519_v25 = vor.u32 %v4556_v19, %v3518_v15  ;;  %v613_v43 = vperm.slane %v5364_v17, 0 }
  0x38   : > { %v3395_v26 = vor.u32 %v4522_v20, %v3392_v21  ;;  %v4554_v27 = vld [vmem:[%s7263_s4 + $0x164] sm:$0xf]  ;;  %v3520_v28 = vld [vmem:[%s7263_s4 + $0x170] sm:$0xf0]  ;;  %v3374_v30 = vld [vmem:[%s7263_s4 + $0x40] sm:$0xf] }
  0x39   : > { %1202 = vmatpush.bf16.msrb.mxu0 %v3443_v35  ;;  %1216 = vmatpush.bf16.msrb.mxu1 %v3571_v37  ;;  %v3523_v29 = vor.u32 %v4554_v27, %v3520_v28  ;;  %v4520_v31 = vld [vmem:[%s7263_s4 + $0x4c] sm:$0xf0]  ;;  %v3502_v32 = vld [vmem:[%s7263_s4 + $0x140] sm:$0xf]  ;;  %v4518_v35 = vld [vmem:[%s7263_s4 + $0x44] sm:$0xf] }
  0x3a   : > { %v3375_v33 = vor.u32 %v4520_v31, %v3374_v30  ;;  %v4552_v34 = vld [vmem:[%s7263_s4 + $0x14c] sm:$0xf0]  ;;  %v3376_v36 = vld [vmem:[%s7263_s4 + $0x50] sm:$0xf0]  ;;  %v396_v37 = vperm.slane %v5351_v13, 0  ;;  %v614_v44 = vperm.slane %v5364_v17, 1 }
  0x3b   : > { %1177 = vmatpush.bf16.msra.mxu2 %v3391_v24  ;;  %1191 = vmatpush.bf16.msra.mxu3 %v3519_v25  ;;  %v3503_v39 = vor.u32 %v4552_v34, %v3502_v32  ;;  %v3379_v40 = vor.u32 %v4518_v35, %v3376_v36  ;;  %v4550_v41 = vld [vmem:[%s7263_s4 + $0x144] sm:$0xf]  ;;  %v3504_v42 = vld [vmem:[%s7263_s4 + $0x150] sm:$0xf0]  ;;  %v582_v45 = vperm.slane %v5369_v18, 0  ;;  %v583_v47 = vperm.slane %v5369_v18, 1 }
  0x3c   : > { %v3507_v46 = vor.u32 %v4550_v41, %v3504_v42  ;;  %v4516_v54 = vld [vmem:[%s7263_s4 + $0x2c] sm:$0xf0]  ;;  %v3486_v56 = vld [vmem:[%s7263_s4 + $0x120] sm:$0xf]  ;;  %v4514_v58 = vld [vmem:[%s7263_s4 + $0x24] sm:$0xf] }
  0x3d   : > { %1203 = vmatpush.bf16.msrb.mxu0 %v3427_v50  ;;  %1217 = vmatpush.bf16.msrb.mxu1 %v3555_v51  ;;  %v551_v50 = vperm.slane %v5384_v23, 0  ;;  %v3358_v51 = vld [vmem:[%s7263_s4 + $0x20] sm:$0xf]  ;;  %v4548_v57 = vld [vmem:[%s7263_s4 + $0x12c] sm:$0xf0]  ;;  %s3174_s23 = sshll.u32 %s3171_s13, 4  ;;  %s3175_s23 = int_to_ptr.hbm [resolvable:$true] %s3174_s23 }
  0x3e   : > { %v3359_v55 = vor.u32 %v4516_v54, %v3358_v51  ;;  %v3360_v59 = vld [vmem:[%s7263_s4 + $0x30] sm:$0xf0]  ;;  %v4546_v60 = vld [vmem:[%s7263_s4 + $0x124] sm:$0xf]  ;;  %v3487_v63 = vor.u32 %v4548_v57, %v3486_v56  ;;  %v3342_v15 = vld [vmem:[%s7263_s4] sm:$0xf] }
  0x3f   : > { %1178 = vmatpush.bf16.msra.mxu2 %v3375_v33  ;;  %1192 = vmatpush.bf16.msra.mxu3 %v3503_v39  ;;  %v3488_v61 = vld [vmem:[%s7263_s4 + $0x130] sm:$0xf0]  ;;  %v3363_v0 = vor.u32 %v4514_v58, %v3360_v59  ;;  %v4512_v19 = vld [vmem:[%s7263_s4 + $0xc] sm:$0xf0]  ;;  %v3470_v20 = vld [vmem:[%s7263_s4 + $0x100] sm:$0xf] }
  0x40   : > { %v3343_v27 = vor.u32 %v4512_v19, %v3342_v15  ;;  %v4544_v28 = vld [vmem:[%s7263_s4 + $0x10c] sm:$0xf0]  ;;  %v4542_v30 = vld [vmem:[%s7263_s4 + $0x104] sm:$0xf]  ;;  %v3472_v31 = vld [vmem:[%s7263_s4 + $0x110] sm:$0xf0] }
  0x41   : > { %1204 = vmatpush.bf16.msrb.mxu0 %v3411_v62  ;;  %1218 = vmatpush.bf16.msrb.mxu1 %v3539_v2  ;;  %v552_v62 = vperm.slane %v5384_v23, 1  ;;  %v3491_v2 = vor.u32 %v4546_v60, %v3488_v61  ;;  %v3462_v32 = vld [vmem:[%s7263_s4 + $0xe8] sm:$0xf]  ;;  %v3471_v34 = vor.u32 %v4544_v28, %v3470_v20  ;;  %v3475_v36 = vor.u32 %v4542_v30, %v3472_v31  ;;  %v4541_v39 = vld [vmem:[%s7263_s4 + $0xf4] sm:$0xf0]  ;;  %s3159_s9 = scalar_lea.sflag [#allocation3], %s313_s18 }
  0x42   : > { %v4573_v41 = vld [vmem:[%s7263_s4 + $0x1f4] sm:$0xf0]  ;;  %v4539_v56 = vld [vmem:[%s7263_s4 + $0xec] sm:$0xf]  ;;  %v3464_v57 = vld [vmem:[%s7263_s4 + $0xf8] sm:$0xf0] }
  0x43   : > { %1179 = vmatpush.bf16.msra.mxu2 %v3359_v55  ;;  %1193 = vmatpush.bf16.msra.mxu3 %v3487_v63  ;;  %v5503_v55 = vld [vmem:[%s7261_s2 + $0x11] ss:$8 sm:$0x3]  ;;  %v4571_v58 = vld [vmem:[%s7263_s4 + $0x1ec] sm:$0xf]  ;;  %s4938_s19 = sshra.s32 %s3175_s23, 4  ;;  %s4939_s19 = int_to_ptr.hbm [resolvable:$true] %s4938_s19 }
  0x44   : > { %v4537_v48 = vld [vmem:[%s7263_s4 + $0xd4] sm:$0xf0]  ;;  %v3574_v19 = vld [vmem:[%s7263_s4 + $0x1c8] sm:$0xf]  ;;  %v3448_v28 = vld [vmem:[%s7263_s4 + $0xd8] sm:$0xf0]  ;;  %p4945_p0 = scmp.lt.s32.totalorder %s4939_s19, %s7267_s8 }
  0x45   : > { %1205 = vmatpush.bf16.msrb.mxu0 %v3395_v26  ;;  %1219 = vmatpush.bf16.msrb.mxu1 %v3523_v29  ;;  %v4510_v29 = vld [vmem:[%s7263_s4 + $0x4] sm:$0xf]  ;;  %v4569_v20 = vld [vmem:[%s7263_s4 + $0x1d4] sm:$0xf0]  ;;  %v3430_v49 = vld [vmem:[%s7263_s4 + $0xa8] sm:$0xf] }
  0x46   : > { %v4543_v17 = vld [vmem:[%s7263_s4 + $0x10c] sm:$0xf]  ;;  %s4940_s21 = scalar_lea.hbm %s4939_s19, 112 }
  0x47   : > { %1180 = vmatpush.bf16.msra.mxu2 %v3343_v27  ;;  %1194 = vmatpush.bf16.msra.mxu3 %v3471_v34  ;;  %p4941_p11 = scmp.ne.s32.totalorder %s4939_s19, %s4940_s21  ;;  %p4946_p1 = scmp.lt.s32.totalorder %s4944_s25, %s4940_s21 }
  0x49   : > { %1206 = vmatpush.bf16.msrb.mxu0 %v3379_v40  ;;  %1220 = vmatpush.bf16.msrb.mxu1 %v3507_v46  ;;  %v3590_v40 = vld [vmem:[%s7263_s4 + $0x1e8] sm:$0xf]  ;;  %p4942_p12 = pnand %p4941_p11, %p5075_p5  ;;  %p4947_p2 = por %p4946_p1, %p4945_p0 }
  0x4a   : > { %v3591_v15 = vor.u32 %v4573_v41, %v3590_v40 }
  0x4b   : > { %p4943_p13 = pneg %p4942_p12 }
  0x4c   : > { %1243 = vmatpush.bf16.msrb.mxu3 %v3591_v15  ;;  %v4565_v15 = vld [vmem:[%s7263_s4 + $0x1b4] sm:$0xf0] }
  0x4d   : > { %1207 = vmatpush.bf16.msrb.mxu0 %v3363_v0  ;;  %1221 = vmatpush.bf16.msrb.mxu1 %v3491_v2  ;;  %v3592_v0 = vld [vmem:[%s7263_s4 + $0x1f8] sm:$0xf0]  ;;  %p4948_p3 = pnand %p4947_p2, %p4943_p13 }
  0x4e   : > { %v3595_v27 = vor.u32 %v4571_v58, %v3592_v0 }
  0x51   : > { %1222 = vmatpush.bf16.msrb.mxu1 %v3475_v36  ;;  %v644_v36 = vperm.slane %v5503_v55, 0 }
  0x55   : > { %1271 = vmatpush.bf16.msra.mxu1 %v3595_v27 }
  0x7c   : > { %v5359_v16 = vpop.permute.xlu2 %4867 }
  0x7d   : > { %v4870_v10 = vunpack.i.h.bf16 %v5359_v16  ;;  %v4869_v21 = vunpack.i.l.bf16 %v5359_v16  ;;  %v3344_v16 = vld [vmem:[%s7263_s4 + $0x10] sm:$0xf0] }
  0x7e   : > { %v3347_v35 = vor.u32 %v4510_v29, %v3344_v16  ;;  %v4567_v29 = vld [vmem:[%s7263_s4 + $0x1cc] sm:$0xf]  ;;  %v3576_v16 = vld [vmem:[%s7263_s4 + $0x1d8] sm:$0xf0] }
  0x7f   : > { %v5493_v42 = vmul.f32 %v4870_v10, %v489_v3  ;;  %v5497_v46 = vmul.f32 %v4870_v10, %v490_v4  ;;  %v5516_v59 = vmul.f32 %v4869_v21, %v489_v3  ;;  %v5520_v60 = vmul.f32 %v4869_v21, %v490_v4  ;;  %v3446_v3 = vld [vmem:[%s7263_s4 + $0xc8] sm:$0xf]  ;;  %v4535_v21 = vld [vmem:[%s7263_s4 + $0xcc] sm:$0xf] }
  0x80   : > { %1208 = vmatpush.bf16.msrb.mxu0 %v3347_v35  ;;  %v3463_v10 = vor.u32 %v4541_v39, %v3462_v32  ;;  %v3575_v39 = vor.u32 %v4569_v20, %v3574_v19  ;;  %v3451_v40 = vor.u32 %v4535_v21, %v3448_v28  ;;  %v3579_v41 = vor.u32 %v4567_v29, %v3576_v16  ;;  %v4531_v19 = vld [vmem:[%s7263_s4 + $0xac] sm:$0xf]  ;;  %v3432_v20 = vld [vmem:[%s7263_s4 + $0xb8] sm:$0xf0]  ;;  %v3414_v16 = vld [vmem:[%s7263_s4 + $0x88] sm:$0xf] }
  0x81   : > { %v3560_v21 = vld [vmem:[%s7263_s4 + $0x1b8] sm:$0xf0]  ;;  %v3435_v28 = vor.u32 %v4531_v19, %v3432_v20 }
  0x82   : > { %1229 = vmatpush.bf16.msrb.mxu2 %v3463_v10  ;;  %1244 = vmatpush.bf16.msrb.mxu3 %v3575_v39  ;;  %v4561_v39 = vld [vmem:[%s7263_s4 + $0x194] sm:$0xf0] }
  0x83   : > { %1272 = vmatpush.bf16.msra.mxu1 %v3579_v41  ;;  %v3416_v41 = vld [vmem:[%s7263_s4 + $0x98] sm:$0xf0] }
  0x84   : > { %v5449_v14 = vpop.permute.xlu2 %4872 }
  0x85   : > { %v4875_v26 = vunpack.i.h.bf16 %v5449_v14  ;;  %v4874_v63 = vunpack.i.l.bf16 %v5449_v14 }
  0x87   : > { %v5524_v61 = vmul.f32 %v4875_v26, %v520_v9  ;;  %v5539_v2 = vmul.f32 %v4875_v26, %v521_v11  ;;  %v3467_v26 = vor.u32 %v4539_v56, %v3464_v57 }
  0x89   : > { %1257 = vmatpush.bf16.msra.mxu0 %v3467_v26 }
  0x8d   : > { %1258 = vmatpush.bf16.msra.mxu0 %v3451_v40  ;;  %v4527_v40 = vld [vmem:[%s7263_s4 + $0x8c] sm:$0xf] }
  0x90   : > { %v4857_v24 = vpop.permute.xlu1 %4856  ;;  %v5461_v25 = vpop.permute.xlu0 %4845 }
  0x91   : > { %v4859_v33 = vunpack.i.h.bf16 %v4857_v24  ;;  %v4858_v51 = vunpack.i.l.bf16 %v4857_v24  ;;  %v4848_v54 = vunpack.i.h.bf16 %v5461_v25  ;;  %v4847_v4 = vunpack.i.l.bf16 %v5461_v25  ;;  %1259 = vmatpush.bf16.msra.mxu0 %v3435_v28 }
  0x93   : > { %v5552_v24 = vmul.f32 %v4859_v33, %v427_v5  ;;  %v5556_v25 = vmul.f32 %v4859_v33, %v428_v6  ;;  %v431_v30 = vmul.f32 %v4858_v51, %v427_v5  ;;  %v432_v31 = vmul.f32 %v4858_v51, %v428_v6  ;;  %v4533_v6 = vld [vmem:[%s7263_s4 + $0xb4] sm:$0xf0]  ;;  %v3558_v51 = vld [vmem:[%s7263_s4 + $0x1a8] sm:$0xf] }
  0x94   : > { %v371_v32 = vmul.f32 %v4848_v54, %v365_v7  ;;  %v3447_v33 = vor.u32 %v4537_v48, %v3446_v3  ;;  %v372_v0 = vmul.f32 %v4848_v54, %v366_v8  ;;  %v369_v3 = vmul.f32 %v4847_v4, %v365_v7 }
  0x95   : > { %v370_v48 = vmul.f32 %v4847_v4, %v366_v8  ;;  %v3431_v10 = vor.u32 %v4533_v6, %v3430_v49  ;;  %v4563_v4 = vld [vmem:[%s7263_s4 + $0x1ac] sm:$0xf] }
  0x96   : > { %1230 = vmatpush.bf16.msrb.mxu2 %v3447_v33  ;;  %v3563_v29 = vor.u32 %v4563_v4, %v3560_v21  ;;  %v4529_v33 = vld [vmem:[%s7263_s4 + $0x94] sm:$0xf0] }
  0x98   : > { %v4862_v34 = vpop.permute.xlu1 %4861  ;;  %v4851_v35 = vpop.permute.xlu0 %4850  ;;  %1273 = vmatpush.bf16.msra.mxu1 %v3563_v29 }
  0x99   : > { %v4864_v56 = vunpack.i.h.bf16 %v4862_v34  ;;  %v4863_v57 = vunpack.i.l.bf16 %v4862_v34  ;;  %v4853_v5 = vunpack.i.h.bf16 %v4851_v35  ;;  %v4852_v58 = vunpack.i.l.bf16 %v4851_v35 }
  0x9a   : > { %1231 = vmatpush.bf16.msrb.mxu2 %v3431_v10 }
  0x9b   : > { %v464_v54 = vmul.f32 %v4864_v56, %v458_v12  ;;  %v465_v52 = vmul.f32 %v4864_v56, %v459_v22  ;;  %v462_v7 = vmul.f32 %v4863_v57, %v458_v12  ;;  %v463_v8 = vmul.f32 %v4863_v57, %v459_v22  ;;  %v5646_v57 = vpop.permute.xlu2 %4887 }
  0x9c   : > { %v402_v26 = vmul.f32 %v4853_v5, %v396_v37  ;;  %v403_v27 = vmul.f32 %v4853_v5, %v397_v38  ;;  %v400_v12 = vmul.f32 %v4852_v58, %v396_v37  ;;  %v401_v1 = vmul.f32 %v4852_v58, %v397_v38  ;;  %v3542_v37 = vld [vmem:[%s7263_s4 + $0x188] sm:$0xf] }
  0x9d   : > { %v3559_v22 = vor.u32 %v4565_v15, %v3558_v51  ;;  %v524_v56 = vmul.f32 %v4874_v63, %v520_v9  ;;  %v3415_v5 = vor.u32 %v4529_v33, %v3414_v16  ;;  %v3543_v58 = vor.u32 %v4561_v39, %v3542_v37  ;;  %v4555_v16 = vld [vmem:[%s7263_s4 + $0x16c] sm:$0xf]  ;;  %v3528_v33 = vld [vmem:[%s7263_s4 + $0x178] sm:$0xf0]  ;;  %v3510_v39 = vld [vmem:[%s7263_s4 + $0x148] sm:$0xf] }
  0x9e   : > { %v404_v13 = vadd.f32 %v400_v12, %v369_v3  ;;  %v405_v38 = vadd.f32 %v401_v1, %v370_v48  ;;  %v406_v34 = vadd.f32 %v402_v26, %v371_v32  ;;  %v407_v35 = vadd.f32 %v403_v27, %v372_v0  ;;  %v4557_v12 = vld [vmem:[%s7263_s4 + $0x174] sm:$0xf0]  ;;  %v4523_v1 = vld [vmem:[%s7263_s4 + $0x6c] sm:$0xf] }
  0x9f   : > { %v525_v32 = vmul.f32 %v4874_v63, %v521_v11  ;;  %1245 = vmatpush.bf16.msrb.mxu3 %v3559_v22  ;;  %v3419_v11 = vor.u32 %v4527_v40, %v3416_v41  ;;  %1232 = vmatpush.bf16.msrb.mxu2 %v3415_v5  ;;  %v3400_v22 = vld [vmem:[%s7263_s4 + $0x78] sm:$0xf0]  ;;  %v4553_v40 = vld [vmem:[%s7263_s4 + $0x154] sm:$0xf0] }
  0xa0   : > { %v435_v49 = vadd.f32 %v431_v30, %v404_v13  ;;  %v436_v6 = vadd.f32 %v432_v31, %v405_v38  ;;  %v437_v51 = vadd.f32 %v5552_v24, %v406_v34  ;;  %v438_v0 = vadd.f32 %v5556_v25, %v407_v35  ;;  %v5650_v3 = vpop.permute.xlu1 %4882  ;;  %v4878_v48 = vpop.permute.xlu0 %4877  ;;  %v4559_v24 = vld [vmem:[%s7263_s4 + $0x18c] sm:$0xf]  ;;  %v3544_v25 = vld [vmem:[%s7263_s4 + $0x198] sm:$0xf0]  ;;  %v4521_v35 = vld [vmem:[%s7263_s4 + $0x54] sm:$0xf0] }
  0xa1   : > { %v4884_v53 = vunpack.i.l.bf16 %v5650_v3  ;;  %v4880_v9 = vunpack.i.h.bf16 %v4878_v48  ;;  %v4879_v14 = vunpack.i.l.bf16 %v4878_v48  ;;  %v4889_v31 = vunpack.i.l.bf16 %v5646_v57  ;;  %1260 = vmatpush.bf16.msra.mxu0 %v3419_v11  ;;  %v3366_v11 = vld [vmem:[%s7263_s4 + $0x28] sm:$0xf] }
  0xa2   : > { %v466_v63 = vadd.f32 %v462_v7, %v435_v49  ;;  %v467_v10 = vadd.f32 %v463_v8, %v436_v6  ;;  %v468_v15 = vadd.f32 %v464_v54, %v437_v51  ;;  %v469_v30 = vadd.f32 %v465_v52, %v438_v0  ;;  %v3398_v54 = vld [vmem:[%s7263_s4 + $0x68] sm:$0xf]  ;;  %v4525_v52 = vld [vmem:[%s7263_s4 + $0x74] sm:$0xf0]  ;;  %v4519_v6 = vld [vmem:[%s7263_s4 + $0x4c] sm:$0xf] }
  0xa3   : > { %v4885_v19 = vunpack.i.h.bf16 %v5650_v3  ;;  %v586_v20 = vmul.f32 %v4884_v53, %v582_v45  ;;  %v587_v7 = vmul.f32 %v4884_v53, %v583_v47  ;;  %v3526_v8 = vld [vmem:[%s7263_s4 + $0x168] sm:$0xf]  ;;  %v557_v4 = vmul.f32 %v4880_v9, %v551_v50  ;;  %1246 = vmatpush.bf16.msrb.mxu3 %v3543_v58  ;;  %v3384_v51 = vld [vmem:[%s7263_s4 + $0x58] sm:$0xf0]  ;;  %v4551_v0 = vld [vmem:[%s7263_s4 + $0x14c] sm:$0xf] }
  0xa4   : > { %v558_v21 = vmul.f32 %v4880_v9, %v552_v62  ;;  %v497_v26 = vadd.f32 %v5516_v59, %v466_v63  ;;  %v498_v27 = vadd.f32 %v5520_v60, %v467_v10  ;;  %v499_v28 = vadd.f32 %v5493_v42, %v468_v15  ;;  %v4517_v63 = vld [vmem:[%s7263_s4 + $0x34] sm:$0xf0] }
  0xa5   : > { %v500_v29 = vadd.f32 %v5497_v46, %v469_v30  ;;  %v555_v59 = vmul.f32 %v4879_v14, %v551_v50  ;;  %v556_v60 = vmul.f32 %v4879_v14, %v552_v62  ;;  %v3547_v42 = vor.u32 %v4559_v24, %v3544_v25  ;;  %v3382_v50 = vld [vmem:[%s7263_s4 + $0x48] sm:$0xf]  ;;  %v3512_v14 = vld [vmem:[%s7263_s4 + $0x158] sm:$0xf0] }
  0xa6   : > { %v528_v37 = vadd.f32 %v524_v56, %v497_v26  ;;  %v529_v13 = vadd.f32 %v525_v32, %v498_v27  ;;  %v3399_v38 = vor.u32 %v4525_v52, %v3398_v54  ;;  %v530_v23 = vadd.f32 %v5524_v61, %v499_v28  ;;  %v3494_v25 = vld [vmem:[%s7263_s4 + $0x128] sm:$0xf]  ;;  %v3368_v52 = vld [vmem:[%s7263_s4 + $0x38] sm:$0xf0] }
  0xa7   : > { %v531_v62 = vadd.f32 %v5539_v2, %v500_v29  ;;  %v3527_v46 = vor.u32 %v4557_v12, %v3526_v8  ;;  %v3403_v34 = vor.u32 %v4523_v1, %v3400_v22  ;;  %v645_v61 = vperm.slane %v5503_v55, 1  ;;  %1274 = vmatpush.bf16.msra.mxu1 %v3547_v42  ;;  %v4547_v8 = vld [vmem:[%s7263_s4 + $0x12c] sm:$0xf]  ;;  %v4513_v22 = vld [vmem:[%s7263_s4 + $0x14] sm:$0xf0] }
  0xa8   : > { %v559_v41 = vadd.f32 %v555_v59, %v528_v37  ;;  %v560_v56 = vadd.f32 %v556_v60, %v529_v13  ;;  %v4893_v32 = vpop.permute.xlu0 %4892  ;;  %1233 = vmatpush.bf16.msrb.mxu2 %v3399_v38  ;;  %v3531_v2 = vor.u32 %v4555_v16, %v3528_v33  ;;  %v561_v5 = vadd.f32 %v557_v4, %v530_v23  ;;  %v3496_v4 = vld [vmem:[%s7263_s4 + $0x138] sm:$0xf0]  ;;  %v3478_v28 = vld [vmem:[%s7263_s4 + $0x108] sm:$0xf]  ;;  %v4545_v29 = vld [vmem:[%s7263_s4 + $0x114] sm:$0xf0] }
  0xa9   : > { %v562_v58 = vadd.f32 %v558_v21, %v531_v62  ;;  %v4894_v49 = vunpack.i.l.bf16 %v4893_v32  ;;  %1247 = vmatpush.bf16.msrb.mxu3 %v3527_v46  ;;  %1261 = vmatpush.bf16.msra.mxu0 %v3403_v34  ;;  %v3383_v53 = vor.u32 %v4521_v35, %v3382_v50  ;;  %v3511_v9 = vor.u32 %v4553_v40, %v3510_v39  ;;  %v3350_v21 = vld [vmem:[%s7263_s4 + $0x8] sm:$0xf]  ;;  %v4511_v50 = vld [vmem:[%s7263_s4 + $0xc] sm:$0xf]  ;;  %v3352_v23 = vld [vmem:[%s7263_s4 + $0x18] sm:$0xf0] }
  0xaa   : > { %v590_v3 = vadd.f32 %v586_v20, %v559_v41  ;;  %v591_v48 = vadd.f32 %v587_v7, %v560_v56  ;;  %v4890_v10 = vunpack.i.h.bf16 %v5646_v57  ;;  %v617_v15 = vmul.f32 %v4889_v31, %v613_v43 }
  0xab   : > { %v618_v30 = vmul.f32 %v4889_v31, %v614_v44  ;;  %v588_v24 = vmul.f32 %v4885_v19, %v582_v45  ;;  %v589_v20 = vmul.f32 %v4885_v19, %v583_v47  ;;  %v4895_v7 = vunpack.i.h.bf16 %v4893_v32  ;;  %1275 = vmatpush.bf16.msra.mxu1 %v3531_v2  ;;  %v4549_v31 = vld [vmem:[%s7263_s4 + $0x134] sm:$0xf0]  ;;  %v4515_v45 = vld [vmem:[%s7263_s4 + $0x2c] sm:$0xf] }
  0xac   : > { %v648_v57 = vmul.f32 %v4894_v49, %v644_v36  ;;  %v649_v54 = vmul.f32 %v4894_v49, %v645_v61  ;;  %1234 = vmatpush.bf16.msrb.mxu2 %v3383_v53  ;;  %v3387_v18 = vor.u32 %v4519_v6, %v3384_v51  ;;  %v3515_v47 = vor.u32 %v4551_v0, %v3512_v14  ;;  %v4018_v0 = vld [vmem:[%s7265_s6 + $0x348] sm:$0xf]  ;;  %v4626_v53 = vld [vmem:[%s7265_s6 + $0x1a0] sm:$0xf0] }
  0xad   : > { %1248 = vmatpush.bf16.msrb.mxu3 %v3511_v9  ;;  %v3367_v19 = vor.u32 %v4517_v63, %v3366_v11  ;;  %v621_v26 = vadd.f32 %v617_v15, %v590_v3  ;;  %v622_v27 = vadd.f32 %v618_v30, %v591_v48  ;;  %v592_v12 = vadd.f32 %v588_v24, %v561_v5  ;;  %v4682_v3 = vld [vmem:[%s7265_s6 + $0x360] sm:$0xf0]  ;;  %v3794_v48 = vld [vmem:[%s7265_s6 + $0x188] sm:$0xf] }
  0xae   : > { %v593_v1 = vadd.f32 %v589_v20, %v562_v58  ;;  %1262 = vmatpush.bf16.msra.mxu0 %v3387_v18  ;;  %v3495_v16 = vor.u32 %v4549_v31, %v3494_v25  ;;  %v3371_v33 = vor.u32 %v4515_v45, %v3368_v52  ;;  %v619_v37 = vmul.f32 %v4890_v10, %v613_v43  ;;  %v4466_v9 = vld [vmem:[%s7265_s6 + $0x6c8] sm:$0xf]  ;;  %v4794_v63 = vld [vmem:[%s7265_s6 + $0x6e0] sm:$0xf0]  ;;  %v3990_v31 = vld [vmem:[%s7265_s6 + $0x310] sm:$0xf] }
  0xaf   : > { %v620_v13 = vmul.f32 %v4890_v10, %v614_v44  ;;  %v650_v42 = vmul.f32 %v4895_v7, %v644_v36  ;;  %1276 = vmatpush.bf16.msra.mxu1 %v3515_v47  ;;  %v3499_v38 = vor.u32 %v4547_v8, %v3496_v4  ;;  %v651_v62 = vmul.f32 %v4895_v7, %v645_v61  ;;  %v3480_v44 = vld [vmem:[%s7263_s4 + $0x118] sm:$0xf0]  ;;  %v4242_v10 = vld [vmem:[%s7265_s6 + $0x508] sm:$0xf]  ;;  %v4738_v15 = vld [vmem:[%s7265_s6 + $0x520] sm:$0xf0] }
  0xb0   : > { %1235 = vmatpush.bf16.msrb.mxu2 %v3367_v19  ;;  %v3351_v43 = vor.u32 %v4513_v22, %v3350_v21  ;;  %v3479_v46 = vor.u32 %v4545_v29, %v3478_v28  ;;  %v652_v55 = vadd.f32 %v648_v57, %v621_v26  ;;  %v653_v36 = vadd.f32 %v649_v54, %v622_v27  ;;  %v4675_v45 = vld [vmem:[%s7265_s6 + $0x328] sm:$0xf0]  ;;  %v3766_v18 = vld [vmem:[%s7265_s6 + $0x150] sm:$0xf]  ;;  %v4668_v22 = vld [vmem:[%s7265_s6 + $0x2f0] sm:$0xf0] }
  0xb1   : > { %v746_v59 = vpop.f32.mrf.mxu0  ;;  %v760_v60 = vpop.f32.mrf.mxu1  ;;  %1249 = vmatpush.bf16.msrb.mxu3 %v3495_v16  ;;  %v623_v34 = vadd.f32 %v619_v37, %v592_v12  ;;  %v624_v35 = vadd.f32 %v620_v13, %v593_v1  ;;  %v3355_v39 = vor.u32 %v4511_v50, %v3352_v23  ;;  %v3483_v56 = vor.u32 %v4543_v17, %v3480_v44  ;;  %v4619_v47 = vld [vmem:[%s7265_s6 + $0x168] sm:$0xf0]  ;;  %v4438_v8 = vld [vmem:[%s7265_s6 + $0x690] sm:$0xf]  ;;  %v3962_v1 = vld [vmem:[%s7265_s6 + $0x2d8] sm:$0xf] }
  0xb2   : > { %1263 = vmatpush.bf16.msra.mxu0 %v3371_v33  ;;  %v747_v40 = vadd.f32 %v746_v59, %v652_v55  ;;  %v761_v41 = vadd.f32 %v760_v60, %v653_v36  ;;  %v4019_v54 = vor.u32 %v4682_v3, %v4018_v0  ;;  %v3795_v52 = vor.u32 %v4626_v53, %v3794_v48  ;;  %v4787_v21 = vld [vmem:[%s7265_s6 + $0x6a8] sm:$0xf0]  ;;  %v4214_v26 = vld [vmem:[%s7265_s6 + $0x4d0] sm:$0xf]  ;;  %v3738_v29 = vld [vmem:[%s7265_s6 + $0x118] sm:$0xf] }
  0xb3   : > { %1277 = vmatpush.bf16.msra.mxu1 %v3499_v38  ;;  %v654_v61 = vadd.f32 %v650_v42, %v623_v34  ;;  %v655_v32 = vadd.f32 %v651_v62, %v624_v35  ;;  %v4467_v19 = vor.u32 %v4794_v63, %v4466_v9  ;;  %v4243_v4 = vor.u32 %v4738_v15, %v4242_v10  ;;  %v4731_v27 = vld [vmem:[%s7265_s6 + $0x4e8] sm:$0xf0]  ;;  %v4612_v59 = vld [vmem:[%s7265_s6 + $0x130] sm:$0xf0]  ;;  %v4410_v16 = vld [vmem:[%s7265_s6 + $0x658] sm:$0xf] }
  0xb4   : > { %1236 = vmatpush.bf16.msrb.mxu2 %v3351_v43  ;;  %v769_v58 = vmul.f32 0.2, %v747_v40  ;;  %v770_v49 = vmul.f32 0.2, %v761_v41  ;;  %vm765_vm6 = vcmp.gt.f32.partialorder %v747_v40, 0.0  ;;  %vm766_vm7 = vcmp.gt.f32.partialorder %v761_v41, 0.0 }
  0xb5   : > { %1250 = vmatpush.bf16.msrb.mxu3 %v3479_v46  ;;  %v3991_v12 = vor.u32 %v4675_v45, %v3990_v31  ;;  %v3767_v28 = vor.u32 %v4619_v47, %v3766_v18  ;;  %v4439_v60 = vor.u32 %v4787_v21, %v4438_v8  ;;  %v4215_v33 = vor.u32 %v4731_v27, %v4214_v26  ;;  %v4780_v37 = vld [vmem:[%s7265_s6 + $0x670] sm:$0xf0]  ;;  %v4186_v13 = vld [vmem:[%s7265_s6 + $0x498] sm:$0xf]  ;;  %v3934_v50 = vld [vmem:[%s7265_s6 + $0x2a0] sm:$0xf] }
  0xb6   : > { %1264 = vmatpush.bf16.msra.mxu0 %v3355_v39  ;;  %v773_v30 = vsel %vm765_vm6, %v747_v40, %v769_v58  ;;  %v774_v24 = vsel %vm766_vm7, %v761_v41, %v770_v49  ;;  %v4724_v42 = vld [vmem:[%s7265_s6 + $0x4b0] sm:$0xf0]  ;;  %v3963_v38 = vor.u32 %v4668_v22, %v3962_v1  ;;  %v4661_v23 = vld [vmem:[%s7265_s6 + $0x2b8] sm:$0xf0]  ;;  %v3739_v62 = vor.u32 %v4612_v59, %v3738_v29  ;;  %v3710_v43 = vld [vmem:[%s7265_s6 + $0xe0] sm:$0xf] }
  0xb7   : > { %1278 = vmatpush.bf16.msra.mxu1 %v3483_v56  ;;  %v4605_v46 = vld [vmem:[%s7265_s6 + $0xf8] sm:$0xf0]  ;;  %v4411_v17 = vor.u32 %v4780_v37, %v4410_v16  ;;  %v4382_v44 = vld [vmem:[%s7265_s6 + $0x620] sm:$0xf]  ;;  %v4187_v55 = vor.u32 %v4724_v42, %v4186_v13  ;;  %v3935_v39 = vor.u32 %v4661_v23, %v3934_v50  ;;  %v3906_v40 = vld [vmem:[%s7265_s6 + $0x268] sm:$0xf] }
  0xb8   : > { %v4773_v36 = vld [vmem:[%s7265_s6 + $0x638] sm:$0xf0]  ;;  %v4158_v34 = vld [vmem:[%s7265_s6 + $0x460] sm:$0xf]  ;;  %v4654_v41 = vld [vmem:[%s7265_s6 + $0x280] sm:$0xf0]  ;;  %v3711_v56 = vor.u32 %v4605_v46, %v3710_v43 }
  0xb9   : > { %v748_v2 = vpop.f32.mrf.mxu0  ;;  %v762_v5 = vpop.f32.mrf.mxu1  ;;  %v4717_v35 = vld [vmem:[%s7265_s6 + $0x478] sm:$0xf0]  ;;  %v4766_v49 = vld [vmem:[%s7265_s6 + $0x600] sm:$0xf0]  ;;  %v3907_v0 = vor.u32 %v4654_v41, %v3906_v40  ;;  %v3878_v3 = vld [vmem:[%s7265_s6 + $0x230] sm:$0xf] }
  0xba   : > { %v749_v6 = vadd.f32 %v748_v2, %v654_v61  ;;  %v763_v51 = vadd.f32 %v762_v5, %v655_v32  ;;  %v3682_v61 = vld [vmem:[%s7265_s6 + $0xa8] sm:$0xf]  ;;  %v4598_v32 = vld [vmem:[%s7265_s6 + $0xc0] sm:$0xf0]  ;;  %v4383_v2 = vor.u32 %v4773_v36, %v4382_v44  ;;  %v4159_v58 = vor.u32 %v4717_v35, %v4158_v34  ;;  %v4647_v53 = vld [vmem:[%s7265_s6 + $0x248] sm:$0xf0] }
  0xbb   : > { %v4354_v5 = vld [vmem:[%s7265_s6 + $0x5e8] sm:$0xf]  ;;  %v3683_v48 = vor.u32 %v4598_v32, %v3682_v61  ;;  %v3654_v9 = vld [vmem:[%s7265_s6 + $0x70] sm:$0xf]  ;;  %v4759_v15 = vld [vmem:[%s7265_s6 + $0x5c8] sm:$0xf0] }
  0xbc   : > { %vm767_vm8 = vcmp.gt.f32.partialorder %v749_v6, 0.0  ;;  %v771_v14 = vmul.f32 0.2, %v749_v6  ;;  %vm768_vm9 = vcmp.gt.f32.partialorder %v763_v51, 0.0  ;;  %v772_v11 = vmul.f32 0.2, %v763_v51 }
  0xbd   : > { %v4326_v10 = vld [vmem:[%s7265_s6 + $0x5b0] sm:$0xf]  ;;  %v3822_v45 = vld [vmem:[%s7265_s6 + $0x1c0] sm:$0xf]  ;;  %v4679_v47 = vld [vmem:[%s7265_s6 + $0x34c] sm:$0xf] }
  0xbe   : > { %v775_v25 = vsel %vm767_vm8, %v749_v6, %v771_v14  ;;  %v776_v20 = vsel %vm768_vm9, %v763_v51, %v772_v11  ;;  %v4130_v6 = vld [vmem:[%s7265_s6 + $0x428] sm:$0xf]  ;;  %v4710_v51 = vld [vmem:[%s7265_s6 + $0x440] sm:$0xf0]  ;;  %v4591_v14 = vld [vmem:[%s7265_s6 + $0x88] sm:$0xf0]  ;;  %v4355_v11 = vor.u32 %v4766_v49, %v4354_v5 }
  0xbf   : > { %v5817_v7 = vpack.c.bf16 %v775_v25, %v773_v30  ;;  %v5819_v57 = vpack.c.bf16 %v776_v20, %v774_v24  ;;  %v4131_v63 = vor.u32 %v4710_v51, %v4130_v6  ;;  %v3879_v30 = vor.u32 %v4647_v53, %v3878_v3  ;;  %v3850_v24 = vld [vmem:[%s7265_s6 + $0x1f8] sm:$0xf]  ;;  %v4640_v20 = vld [vmem:[%s7265_s6 + $0x210] sm:$0xf0]  ;;  %v4577_v8 = vld [vmem:[%s7265_s6 + $0x18] sm:$0xf0] }
  0xc0   : > { %v3655_v25 = vor.u32 %v4591_v14, %v3654_v9  ;;  %v3851_v31 = vor.u32 %v4640_v20, %v3850_v24  ;;  %v4623_v21 = vld [vmem:[%s7265_s6 + $0x18c] sm:$0xf]  ;;  %v3796_v26 = vld [vmem:[%s7265_s6 + $0x1a4] sm:$0xf0]  ;;  %v4672_v22 = vld [vmem:[%s7265_s6 + $0x314] sm:$0xf] }
  0xc1   : > { %1181 = vmatmul.bf16.vlgmr.msra.gmra.mxu2 %v5817_v7  ;;  %1195 = vmatmul.bf16.vlgmr.msra.gmra.mxu3 %v5819_v57  ;;  %v3992_v29 = vld [vmem:[%s7265_s6 + $0x32c] sm:$0xf0]  ;;  %v4616_v59 = vld [vmem:[%s7265_s6 + $0x154] sm:$0xf]  ;;  %v4665_v37 = vld [vmem:[%s7265_s6 + $0x2dc] sm:$0xf] }
  0xc2   : > { %1209 = vmatmul.bf16.vlgmr.msrb.gmra.mxu0 %v5817_v7  ;;  %1223 = vmatmul.bf16.vlgmr.msrb.gmra.mxu1 %v5819_v57  ;;  %v3995_v16 = vor.u32 %v4672_v22, %v3992_v29  ;;  %v3964_v13 = vld [vmem:[%s7265_s6 + $0x2f4] sm:$0xf0]  ;;  %v4752_v50 = vld [vmem:[%s7265_s6 + $0x590] sm:$0xf0]  ;;  %v3936_v43 = vld [vmem:[%s7265_s6 + $0x2bc] sm:$0xf0] }
  0xc3   : > { %2751 = vmatpush.bf16.msra.mxu3 %v4019_v54  ;;  %2737 = vmatpush.bf16.msra.mxu2 %v3795_v52  ;;  %v3626_v54 = vld [vmem:[%s7265_s6 + $0x38] sm:$0xf]  ;;  %v4633_v52 = vld [vmem:[%s7265_s6 + $0x1d8] sm:$0xf0]  ;;  %v3967_v42 = vor.u32 %v4665_v37, %v3964_v13  ;;  %v4703_v44 = vld [vmem:[%s7265_s6 + $0x408] sm:$0xf0] }
  0xc4   : > { %2779 = vmatpush.bf16.msrb.mxu1 %v4467_v19  ;;  %2765 = vmatpush.bf16.msrb.mxu0 %v4243_v4  ;;  %v3598_v19 = vld [vmem:[%s7265_s6] sm:$0xf]  ;;  %v4020_v4 = vld [vmem:[%s7265_s6 + $0x364] sm:$0xf0]  ;;  %v3823_v27 = vor.u32 %v4633_v52, %v3822_v45  ;;  %v4609_v36 = vld [vmem:[%s7265_s6 + $0x11c] sm:$0xf] }
  0xc5   : > { %v4023_v1 = vor.u32 %v4679_v47, %v4020_v4  ;;  %v3740_v34 = vld [vmem:[%s7265_s6 + $0x134] sm:$0xf0]  ;;  %v4745_v40 = vld [vmem:[%s7265_s6 + $0x558] sm:$0xf0]  ;;  %v3908_v61 = vld [vmem:[%s7265_s6 + $0x284] sm:$0xf0] }
  0xc6   : > { %v3743_v35 = vor.u32 %v4609_v36, %v3740_v34  ;;  %v4791_v32 = vld [vmem:[%s7265_s6 + $0x6cc] sm:$0xf]  ;;  %v4468_v5 = vld [vmem:[%s7265_s6 + $0x6e4] sm:$0xf0]  ;;  %v4696_v49 = vld [vmem:[%s7265_s6 + $0x3d0] sm:$0xf0] }
  0xc7   : > { %2752 = vmatpush.bf16.msra.mxu3 %v3991_v12  ;;  %2738 = vmatpush.bf16.msra.mxu2 %v3767_v28  ;;  %v3599_v12 = vor.u32 %v4577_v8, %v3598_v19  ;;  %v3799_v28 = vor.u32 %v4623_v21, %v3796_v26  ;;  %v4471_v6 = vor.u32 %v4791_v32, %v4468_v5  ;;  %v3712_v3 = vld [vmem:[%s7265_s6 + $0xfc] sm:$0xf0]  ;;  %v4644_v53 = vld [vmem:[%s7265_s6 + $0x234] sm:$0xf]  ;;  %v3880_v9 = vld [vmem:[%s7265_s6 + $0x24c] sm:$0xf0] }
  0xc8   : > { %2780 = vmatpush.bf16.msrb.mxu1 %v4439_v60  ;;  %2766 = vmatpush.bf16.msrb.mxu0 %v4215_v33  ;;  %v3768_v60 = vld [vmem:[%s7265_s6 + $0x16c] sm:$0xf0]  ;;  %v4784_v14 = vld [vmem:[%s7265_s6 + $0x694] sm:$0xf]  ;;  %v3684_v20 = vld [vmem:[%s7265_s6 + $0xc4] sm:$0xf0] }
  0xc9   : > { %v3771_v33 = vor.u32 %v4616_v59, %v3768_v60  ;;  %v4637_v45 = vld [vmem:[%s7265_s6 + $0x1fc] sm:$0xf]  ;;  %v3852_v52 = vld [vmem:[%s7265_s6 + $0x214] sm:$0xf0]  ;;  %v4588_v4 = vld [vmem:[%s7265_s6 + $0x74] sm:$0xf] }
  0xca   : > { %v3855_v47 = vor.u32 %v4637_v45, %v3852_v52  ;;  %v4412_v19 = vld [vmem:[%s7265_s6 + $0x674] sm:$0xf0]  ;;  %v3656_v21 = vld [vmem:[%s7265_s6 + $0x8c] sm:$0xf0]  ;;  %v4728_v26 = vld [vmem:[%s7265_s6 + $0x4d4] sm:$0xf] }
  0xcb   : > { %2753 = vmatpush.bf16.msra.mxu3 %v3963_v38  ;;  %2739 = vmatpush.bf16.msra.mxu2 %v3739_v62  ;;  %v4298_v38 = vld [vmem:[%s7265_s6 + $0x578] sm:$0xf]  ;;  %v4658_v62 = vld [vmem:[%s7265_s6 + $0x2a4] sm:$0xf]  ;;  %v4384_v60 = vld [vmem:[%s7265_s6 + $0x63c] sm:$0xf0] }
  0xcc   : > { %2781 = vmatpush.bf16.msrb.mxu1 %v4411_v17  ;;  %2767 = vmatpush.bf16.msrb.mxu0 %v4187_v55  ;;  %v4299_v23 = vor.u32 %v4752_v50, %v4298_v38  ;;  %v3939_v46 = vor.u32 %v4658_v62, %v3936_v43  ;;  %v4102_v17 = vld [vmem:[%s7265_s6 + $0x3f0] sm:$0xf]  ;;  %v4630_v22 = vld [vmem:[%s7265_s6 + $0x1c4] sm:$0xf]  ;;  %v3628_v37 = vld [vmem:[%s7265_s6 + $0x54] sm:$0xf0] }
  0xcd   : > { %v4103_v55 = vor.u32 %v4703_v44, %v4102_v17  ;;  %v4770_v29 = vld [vmem:[%s7265_s6 + $0x624] sm:$0xf]  ;;  %v4188_v38 = vld [vmem:[%s7265_s6 + $0x4b4] sm:$0xf0]  ;;  %v4356_v62 = vld [vmem:[%s7265_s6 + $0x604] sm:$0xf0] }
  0xce   : > { %v3600_v17 = vld [vmem:[%s7265_s6 + $0x1c] sm:$0xf0]  ;;  %v4300_v5 = vld [vmem:[%s7265_s6 + $0x594] sm:$0xf0] }
  0xcf   : > { %2754 = vmatpush.bf16.msra.mxu3 %v3935_v39  ;;  %2740 = vmatpush.bf16.msra.mxu2 %v3711_v56  ;;  %v4270_v39 = vld [vmem:[%s7265_s6 + $0x540] sm:$0xf]  ;;  %v4651_v56 = vld [vmem:[%s7265_s6 + $0x26c] sm:$0xf] }
  0xd0   : > { %2782 = vmatpush.bf16.msrb.mxu1 %v4383_v2  ;;  %2768 = vmatpush.bf16.msrb.mxu0 %v4159_v58  ;;  %v4271_v41 = vor.u32 %v4745_v40, %v4270_v39  ;;  %v3911_v2 = vor.u32 %v4651_v56, %v3908_v61  ;;  %v4074_v58 = vld [vmem:[%s7265_s6 + $0x3b8] sm:$0xf]  ;;  %v4160_v36 = vld [vmem:[%s7265_s6 + $0x47c] sm:$0xf0]  ;;  %v4328_v39 = vld [vmem:[%s7265_s6 + $0x5cc] sm:$0xf0] }
  0xd1   : > { %1237 = vmatmul.bf16.vlgmr.msrb.gmra.mxu2 %v5817_v7  ;;  %1251 = vmatmul.bf16.vlgmr.msrb.gmra.mxu3 %v5819_v57  ;;  %v4075_v51 = vor.u32 %v4696_v49, %v4074_v58  ;;  %v4132_v56 = vld [vmem:[%s7265_s6 + $0x444] sm:$0xf0]  ;;  %v6162_v61 = vld [vmem:[%s7264_s5] sm:$0xf] }
  0xd2   : > { %1265 = vmatmul.bf16.vlgmr.msra.gmra.mxu0 %v5817_v7  ;;  %1279 = vmatmul.bf16.vlgmr.msra.gmra.mxu1 %v5819_v57  ;;  %v4584_v7 = vld [vmem:[%s7265_s6 + $0x50] sm:$0xf0]  ;;  %v4327_v57 = vor.u32 %v4759_v15, %v4326_v10  ;;  %v4046_v10 = vld [vmem:[%s7265_s6 + $0x380] sm:$0xf]  ;;  %v4689_v15 = vld [vmem:[%s7265_s6 + $0x398] sm:$0xf0] }
  0xd3   : > { %2755 = vmatpush.bf16.msra.mxu3 %v3907_v0  ;;  %2741 = vmatpush.bf16.msra.mxu2 %v3683_v48  ;;  %v3627_v18 = vor.u32 %v4584_v7, %v3626_v54  ;;  %v4602_v0 = vld [vmem:[%s7265_s6 + $0xe4] sm:$0xf]  ;;  %v4047_v24 = vor.u32 %v4689_v15, %v4046_v10  ;;  %v4735_v54 = vld [vmem:[%s7265_s6 + $0x50c] sm:$0xf]  ;;  %v846_v49 = vperm.slane %v6162_v61, 1  ;;  %v845_v15 = vperm.slane %v6162_v61, 0 }
  0xd4   : > { %2783 = vmatpush.bf16.msrb.mxu1 %v4355_v11  ;;  %2769 = vmatpush.bf16.msrb.mxu0 %v4131_v63  ;;  %v3715_v48 = vor.u32 %v4602_v0, %v3712_v3  ;;  %v3883_v11 = vor.u32 %v4644_v53, %v3880_v9  ;;  %v4440_v63 = vld [vmem:[%s7265_s6 + $0x6ac] sm:$0xf0]  ;;  %v4742_v53 = vld [vmem:[%s7265_s6 + $0x544] sm:$0xf]  ;;  %v4272_v9 = vld [vmem:[%s7265_s6 + $0x55c] sm:$0xf0] }
  0xd5   : > { %v4076_v10 = vld [vmem:[%s7265_s6 + $0x3d4] sm:$0xf0] }
  0xd7   : > { %2756 = vmatpush.bf16.msra.mxu3 %v3879_v30  ;;  %2742 = vmatpush.bf16.msra.mxu2 %v3655_v25  ;;  %v4443_v30 = vor.u32 %v4784_v14, %v4440_v63  ;;  %v4595_v25 = vld [vmem:[%s7265_s6 + $0xac] sm:$0xf]  ;;  %v4275_v14 = vor.u32 %v4742_v53, %v4272_v9  ;;  %v4693_v63 = vld [vmem:[%s7265_s6 + $0x3bc] sm:$0xf]  ;;  %v3914_v9 = vld [vmem:[%s7265_s6 + $0x270] sm:$0xf] }
  0xd8   : > { %2784 = vmatpush.bf16.msrb.mxu1 %v4327_v57  ;;  %2770 = vmatpush.bf16.msrb.mxu0 %v4103_v55  ;;  %v3687_v7 = vor.u32 %v4595_v25, %v3684_v20  ;;  %v4244_v57 = vld [vmem:[%s7265_s6 + $0x524] sm:$0xf0]  ;;  %v4714_v55 = vld [vmem:[%s7265_s6 + $0x464] sm:$0xf] }
  0xd9   : > { %v4163_v34 = vor.u32 %v4714_v55, %v4160_v36  ;;  %v847_v55 = vperm.slane %v6162_v61, 2 }
  0xdb   : > { %2757 = vmatpush.bf16.msra.mxu3 %v3851_v31  ;;  %2743 = vmatpush.bf16.msra.mxu2 %v3627_v18  ;;  %v4247_v31 = vor.u32 %v4735_v54, %v4244_v57  ;;  %v4777_v18 = vld [vmem:[%s7265_s6 + $0x65c] sm:$0xf]  ;;  %v4686_v54 = vld [vmem:[%s7265_s6 + $0x384] sm:$0xf] }
  0xdc   : > { %2785 = vmatpush.bf16.msrb.mxu1 %v4299_v23  ;;  %2771 = vmatpush.bf16.msrb.mxu0 %v4075_v51  ;;  %v4415_v8 = vor.u32 %v4777_v18, %v4412_v19  ;;  %v4763_v23 = vld [vmem:[%s7265_s6 + $0x5ec] sm:$0xf]  ;;  %v4104_v51 = vld [vmem:[%s7265_s6 + $0x40c] sm:$0xf0] }
  0xdd   : > { %v4359_v43 = vor.u32 %v4763_v23, %v4356_v62  ;;  %v4627_v23 = vld [vmem:[%s7265_s6 + $0x1a8] sm:$0xf0] }
  0xdf   : > { %2758 = vmatpush.bf16.msra.mxu3 %v3823_v27  ;;  %2744 = vmatpush.bf16.msra.mxu2 %v3599_v12  ;;  %v3659_v27 = vor.u32 %v4588_v4, %v3656_v21  ;;  %v4216_v12 = vld [vmem:[%s7265_s6 + $0x4ec] sm:$0xf0]  ;;  %v4683_v21 = vld [vmem:[%s7265_s6 + $0x368] sm:$0xf0] }
  0xe0   : > { %2786 = vmatpush.bf16.msrb.mxu1 %v4271_v41  ;;  %2772 = vmatpush.bf16.msrb.mxu0 %v4047_v24  ;;  %v4707_v41 = vld [vmem:[%s7265_s6 + $0x42c] sm:$0xf]  ;;  %v4026_v4 = vld [vmem:[%s7265_s6 + $0x350] sm:$0xf] }
  0xe1   : > { %v4135_v32 = vor.u32 %v4707_v41, %v4132_v56  ;;  %v3774_v56 = vld [vmem:[%s7265_s6 + $0x158] sm:$0xf] }
  0xe3   : > { %2807 = vmatpush.bf16.msrb.mxu3 %v4023_v1  ;;  %2793 = vmatpush.bf16.msrb.mxu2 %v3799_v28  ;;  %v4219_v1 = vor.u32 %v4728_v26, %v4216_v12  ;;  %v3824_v28 = vld [vmem:[%s7265_s6 + $0x1dc] sm:$0xf0] }
  0xe4   : > { %2835 = vmatpush.bf16.msra.mxu1 %v4471_v6  ;;  %2821 = vmatpush.bf16.msra.mxu0 %v4247_v31  ;;  %v3827_v59 = vor.u32 %v4630_v22, %v3824_v28  ;;  %v4700_v6 = vld [vmem:[%s7265_s6 + $0x3f4] sm:$0xf] }
  0xe7   : > { %2808 = vmatpush.bf16.msrb.mxu3 %v3995_v16  ;;  %2794 = vmatpush.bf16.msrb.mxu2 %v3771_v33  ;;  %v4387_v16 = vor.u32 %v4770_v29, %v4384_v60  ;;  %v4581_v33 = vld [vmem:[%s7265_s6 + $0x3c] sm:$0xf]  ;;  %v848_v29 = vperm.slane %v6162_v61, 3  ;;  %v4620_v61 = vld [vmem:[%s7265_s6 + $0x170] sm:$0xf0] }
  0xe8   : > { %2836 = vmatpush.bf16.msra.mxu1 %v4443_v30  ;;  %2822 = vmatpush.bf16.msra.mxu0 %v4219_v1  ;;  %v3631_v13 = vor.u32 %v4581_v33, %v3628_v37  ;;  %v4079_v30 = vor.u32 %v4693_v63, %v4076_v10  ;;  %v4655_v10 = vld [vmem:[%s7265_s6 + $0x288] sm:$0xf0] }
  0xeb   : > { %2809 = vmatpush.bf16.msrb.mxu3 %v3967_v42  ;;  %2795 = vmatpush.bf16.msrb.mxu2 %v3743_v35  ;;  %v4721_v42 = vld [vmem:[%s7265_s6 + $0x49c] sm:$0xf]  ;;  %v4756_v35 = vld [vmem:[%s7265_s6 + $0x5b4] sm:$0xf] }
  0xec   : > { %2837 = vmatpush.bf16.msra.mxu1 %v4415_v8  ;;  %v4191_v50 = vor.u32 %v4721_v42, %v4188_v38  ;;  %v4331_v40 = vor.u32 %v4756_v35, %v4328_v39  ;;  %v3998_v42 = vld [vmem:[%s7265_s6 + $0x318] sm:$0xf]  ;;  %v4676_v38 = vld [vmem:[%s7265_s6 + $0x330] sm:$0xf0]  ;;  %v4669_v35 = vld [vmem:[%s7265_s6 + $0x2f8] sm:$0xf0] }
  0xee   : > { %2823 = vmatpush.bf16.msra.mxu0 %v4191_v50  ;;  %v3802_v50 = vld [vmem:[%s7265_s6 + $0x190] sm:$0xf] }
  0xef   : > { %2810 = vmatpush.bf16.msrb.mxu3 %v3939_v46  ;;  %2796 = vmatpush.bf16.msrb.mxu2 %v3715_v48  ;;  %v4574_v46 = vld [vmem:[%s7265_s6 + $0x4] sm:$0xf]  ;;  %v4107_v48 = vor.u32 %v4700_v6, %v4104_v51  ;;  %v3803_v36 = vor.u32 %v4627_v23, %v3802_v50  ;;  %v3942_v6 = vld [vmem:[%s7265_s6 + $0x2a8] sm:$0xf]  ;;  %v4641_v23 = vld [vmem:[%s7265_s6 + $0x218] sm:$0xf0] }
  0xf0   : > { %2838 = vmatpush.bf16.msra.mxu1 %v4387_v16  ;;  %v3603_v44 = vor.u32 %v4574_v46, %v3600_v17  ;;  %v3999_v46 = vor.u32 %v4676_v38, %v3998_v42  ;;  %v4662_v51 = vld [vmem:[%s7265_s6 + $0x2c0] sm:$0xf0]  ;;  %v3858_v42 = vld [vmem:[%s7265_s6 + $0x200] sm:$0xf] }
  0xf1   : > { %v3943_v63 = vor.u32 %v4662_v51, %v3942_v6  ;;  %v4028_v6 = vld [vmem:[%s7265_s6 + $0x36c] sm:$0xf0]  ;;  %v3634_v51 = vld [vmem:[%s7265_s6 + $0x40] sm:$0xf] }
  0xf2   : > { %2824 = vmatpush.bf16.msra.mxu0 %v4163_v34  ;;  %v3970_v34 = vld [vmem:[%s7265_s6 + $0x2e0] sm:$0xf] }
  0xf3   : > { %2811 = vmatpush.bf16.msrb.mxu3 %v3911_v2  ;;  %2797 = vmatpush.bf16.msrb.mxu2 %v3687_v7  ;;  %v4749_v2 = vld [vmem:[%s7265_s6 + $0x57c] sm:$0xf]  ;;  %v4048_v7 = vld [vmem:[%s7265_s6 + $0x39c] sm:$0xf0] }
  0xf4   : > { %2839 = vmatpush.bf16.msra.mxu1 %v4359_v43  ;;  %v4303_v58 = vor.u32 %v4749_v2, %v4300_v5  ;;  %v4051_v52 = vor.u32 %v4686_v54, %v4048_v7  ;;  %v3971_v2 = vor.u32 %v4669_v35, %v3970_v34  ;;  %v4222_v34 = vld [vmem:[%s7265_s6 + $0x4d8] sm:$0xf]  ;;  %v4732_v35 = vld [vmem:[%s7265_s6 + $0x4f0] sm:$0xf0] }
  0xf6   : > { %2825 = vmatpush.bf16.msra.mxu0 %v4135_v32 }
  0xf7   : > { %2812 = vmatpush.bf16.msrb.mxu3 %v3883_v11  ;;  %2798 = vmatpush.bf16.msrb.mxu2 %v3659_v27 }
  0xf8   : > { %2840 = vmatpush.bf16.msra.mxu1 %v4331_v40 }
  0xfa   : > { %2826 = vmatpush.bf16.msra.mxu0 %v4107_v48  ;;  %v4613_v48 = vld [vmem:[%s7265_s6 + $0x138] sm:$0xf0] }
  0xfb   : > { %2813 = vmatpush.bf16.msrb.mxu3 %v3855_v47  ;;  %2799 = vmatpush.bf16.msrb.mxu2 %v3631_v13 }
  0xfc   : > { %2841 = vmatpush.bf16.msra.mxu1 %v4303_v58 }
  0xfe   : > { %2827 = vmatpush.bf16.msra.mxu0 %v4079_v30 }
  0xff   : > { %2814 = vmatpush.bf16.msrb.mxu3 %v3827_v59  ;;  %2800 = vmatpush.bf16.msrb.mxu2 %v3603_v44  ;;  %v4027_v59 = vor.u32 %v4683_v21, %v4026_v4  ;;  %v4648_v4 = vld [vmem:[%s7265_s6 + $0x250] sm:$0xf0]  ;;  %v4446_v21 = vld [vmem:[%s7265_s6 + $0x698] sm:$0xf] }
 0x100   : > { %2842 = vmatpush.bf16.msra.mxu1 %v4275_v14 }
 0x102   : > { %2828 = vmatpush.bf16.msra.mxu0 %v4051_v52 }
 0x13f   : > { %v1210_v0 = vpop.f32.mrf.mxu0  ;;  %v1224_v3 = vpop.f32.mrf.mxu1 }
 0x140   : > { %v1211_v11 = vadd.f32 %v1210_v0, %v846_v49 }
 0x142   : > { %v1225_v20 = vadd.f32 %v1224_v3, %v1211_v11  ;;  %v3746_v3 = vld [vmem:[%s7265_s6 + $0x120] sm:$0xf] }
 0x144   : > { %v1182_v24 = vpop.f32.mrf.mxu2  ;;  %v1196_v25 = vpop.f32.mrf.mxu3  ;;  %v1294_v47 = vmul.f32 0.2, %v1225_v20  ;;  %vm1286_vm10 = vcmp.gt.f32.partialorder %v1225_v20, 0.0 }
 0x145   : > { %v1183_v57 = vadd.f32 %v1182_v24, %v845_v15  ;;  %v3747_v24 = vor.u32 %v4613_v48, %v3746_v3  ;;  %v4194_v3 = vld [vmem:[%s7265_s6 + $0x4a0] sm:$0xf]  ;;  %v4725_v48 = vld [vmem:[%s7265_s6 + $0x4b8] sm:$0xf0] }
 0x146   : > { %v1302_v22 = vsel %vm1286_vm10, %v1225_v20, %v1294_v47  ;;  %v3718_v20 = vld [vmem:[%s7265_s6 + $0xe8] sm:$0xf]  ;;  %v3915_v47 = vor.u32 %v4655_v10, %v3914_v9 }
 0x147   : > { %v1212_v31 = vpop.f32.mrf.mxu0  ;;  %v1226_v45 = vpop.f32.mrf.mxu1  ;;  %v1197_v8 = vadd.f32 %v1196_v25, %v1183_v57  ;;  %v4795_v25 = vld [vmem:[%s7265_s6 + $0x6e8] sm:$0xf0]  ;;  %v4606_v57 = vld [vmem:[%s7265_s6 + $0x100] sm:$0xf0] }
 0x148   : > { %v1213_v18 = vadd.f32 %v1212_v31, %v846_v49  ;;  %v3775_v49 = vor.u32 %v4620_v61, %v3774_v56  ;;  %v3830_v56 = vld [vmem:[%s7265_s6 + $0x1c8] sm:$0xf]  ;;  %v4634_v61 = vld [vmem:[%s7265_s6 + $0x1e0] sm:$0xf0] }
 0x149   : > { %v1293_v60 = vmul.f32 0.2, %v1197_v8  ;;  %vm1285_vm12 = vcmp.gt.f32.partialorder %v1197_v8, 0.0 }
 0x14a   : > { %v1227_v19 = vadd.f32 %v1226_v45, %v1213_v18 }
 0x14b   : > { %v1301_v17 = vsel %vm1285_vm12, %v1197_v8, %v1293_v60  ;;  %v3886_v8 = vld [vmem:[%s7265_s6 + $0x238] sm:$0xf] }
 0x14c   : > { %vm1290_vm11 = vcmp.gt.f32.partialorder %v1227_v19, 0.0  ;;  %v1298_v26 = vmul.f32 0.2, %v1227_v19  ;;  %v1184_v27 = vpop.f32.mrf.mxu2  ;;  %v1198_v12 = vpop.f32.mrf.mxu3 }
 0x14d   : > { %v1185_v1 = vadd.f32 %v1184_v27, %v845_v15  ;;  %v4474_v15 = vld [vmem:[%s7265_s6 + $0x6d0] sm:$0xf] }
 0x14e   : > { %v1306_v28 = vsel %vm1290_vm11, %v1227_v19, %v1298_v26  ;;  %v4475_v19 = vor.u32 %v4795_v25, %v4474_v15  ;;  %v4195_v15 = vor.u32 %v4725_v48, %v4194_v3  ;;  %v3606_v25 = vld [vmem:[%s7265_s6 + $0x8] sm:$0xf]  ;;  %v3888_v48 = vld [vmem:[%s7265_s6 + $0x254] sm:$0xf0] }
 0x14f   : > { %v6203_v16 = vpack.c.bf16 %v1306_v28, %v1302_v22  ;;  %v1199_v33 = vadd.f32 %v1198_v12, %v1185_v1  ;;  %v1266_v37 = vpop.f32.mrf.mxu0  ;;  %v1280_v13 = vpop.f32.mrf.mxu1  ;;  %v3719_v1 = vor.u32 %v4606_v57, %v3718_v20  ;;  %v4788_v22 = vld [vmem:[%s7265_s6 + $0x6b0] sm:$0xf0]  ;;  %v3690_v28 = vld [vmem:[%s7265_s6 + $0xb0] sm:$0xf]  ;;  %v4578_v20 = vld [vmem:[%s7265_s6 + $0x20] sm:$0xf0] }
 0x150   : > { %v1267_v43 = vadd.f32 %v1266_v37, %v848_v29  ;;  %v3887_v37 = vor.u32 %v4648_v4, %v3886_v8  ;;  %v4666_v4 = vld [vmem:[%s7265_s6 + $0x2e4] sm:$0xf] }
 0x151   : > { %vm1289_vm13 = vcmp.gt.f32.partialorder %v1199_v33, 0.0  ;;  %v1297_v62 = vmul.f32 0.2, %v1199_v33  ;;  %2759 = vmatmul.bf16.vlgmr.msra.gmra.mxu3 %v6203_v16 }
 0x152   : > { %2863 = vmatpush.bf16.msra.mxu3 %v4027_v59  ;;  %v1281_v32 = vadd.f32 %v1280_v13, %v1267_v43  ;;  %v4250_v59 = vld [vmem:[%s7265_s6 + $0x510] sm:$0xf]  ;;  %v4447_v13 = vor.u32 %v4788_v22, %v4446_v21  ;;  %v4781_v43 = vld [vmem:[%s7265_s6 + $0x678] sm:$0xf0]  ;;  %v3972_v21 = vld [vmem:[%s7265_s6 + $0x2fc] sm:$0xf0] }
 0x153   : > { %v1305_v44 = vsel %vm1289_vm13, %v1199_v33, %v1297_v62  ;;  %v4739_v33 = vld [vmem:[%s7265_s6 + $0x528] sm:$0xf0]  ;;  %v4418_v62 = vld [vmem:[%s7265_s6 + $0x660] sm:$0xf] }
 0x154   : > { %v6225_v39 = vpack.c.bf16 %v1305_v44, %v1301_v17  ;;  %v1238_v40 = vpop.f32.mrf.mxu2  ;;  %v1252_v41 = vpop.f32.mrf.mxu3  ;;  %v1296_v14 = vmul.f32 0.2, %v1281_v32  ;;  %vm1288_vm14 = vcmp.gt.f32.partialorder %v1281_v32, 0.0  ;;  %v4251_v44 = vor.u32 %v4739_v33, %v4250_v59  ;;  %v4753_v33 = vld [vmem:[%s7265_s6 + $0x598] sm:$0xf0] }
 0x155   : > { %v1239_v5 = vadd.f32 %v1238_v40, %v847_v55  ;;  %v3859_v40 = vor.u32 %v4641_v23, %v3858_v42  ;;  %v3975_v59 = vor.u32 %v4666_v4, %v3972_v21  ;;  %v3944_v42 = vld [vmem:[%s7265_s6 + $0x2c4] sm:$0xf0]  ;;  %v4704_v23 = vld [vmem:[%s7265_s6 + $0x410] sm:$0xf0]  ;;  %v4224_v4 = vld [vmem:[%s7265_s6 + $0x4f4] sm:$0xf0] }
 0x156   : > { %2864 = vmatpush.bf16.msra.mxu3 %v3999_v46  ;;  %2745 = vmatmul.bf16.vlgmr.msra.gmra.mxu2 %v6225_v39  ;;  %v1304_v45 = vsel %vm1288_vm14, %v1281_v32, %v1296_v14  ;;  %v4390_v32 = vld [vmem:[%s7265_s6 + $0x628] sm:$0xf] }
 0x157   : > { %v1268_v58 = vpop.f32.mrf.mxu0  ;;  %2849 = vmatpush.bf16.msra.mxu2 %v3803_v36  ;;  %v1282_v53 = vpop.f32.mrf.mxu1  ;;  %v1253_v30 = vadd.f32 %v1252_v41, %v1239_v5  ;;  %v4592_v36 = vld [vmem:[%s7265_s6 + $0x90] sm:$0xf0]  ;;  %v4419_v41 = vor.u32 %v4781_v43, %v4418_v62  ;;  %v4610_v43 = vld [vmem:[%s7265_s6 + $0x124] sm:$0xf] }
 0x158   : > { %v1269_v0 = vadd.f32 %v1268_v58, %v848_v29  ;;  %v4599_v29 = vld [vmem:[%s7265_s6 + $0xc8] sm:$0xf0]  ;;  %v4223_v58 = vor.u32 %v4732_v35, %v4222_v34  ;;  %v4652_v34 = vld [vmem:[%s7265_s6 + $0x274] sm:$0xf] }
 0x159   : > { %v1295_v26 = vmul.f32 0.2, %v1253_v30  ;;  %vm1287_vm0 = vcmp.gt.f32.partialorder %v1253_v30, 0.0  ;;  %v3691_v17 = vor.u32 %v4599_v29, %v3690_v28  ;;  %v4617_v28 = vld [vmem:[%s7265_s6 + $0x15c] sm:$0xf] }
 0x15a   : > { %v1283_v11 = vadd.f32 %v1282_v53, %v1269_v0  ;;  %2865 = vmatpush.bf16.msra.mxu3 %v3971_v2  ;;  %v4774_v2 = vld [vmem:[%s7265_s6 + $0x640] sm:$0xf0]  ;;  %v4585_v0 = vld [vmem:[%s7265_s6 + $0x58] sm:$0xf0]  ;;  %v3831_v53 = vor.u32 %v4634_v61, %v3830_v56  ;;  %v3776_v29 = vld [vmem:[%s7265_s6 + $0x174] sm:$0xf0] }
 0x15b   : > { %2850 = vmatpush.bf16.msra.mxu2 %v3775_v49  ;;  %v1303_v38 = vsel %vm1287_vm0, %v1253_v30, %v1295_v26  ;;  %v4680_v49 = vld [vmem:[%s7265_s6 + $0x354] sm:$0xf]  ;;  %v4391_v9 = vor.u32 %v4774_v2, %v4390_v32  ;;  %v3635_v10 = vor.u32 %v4585_v0, %v3634_v51  ;;  %v4673_v30 = vld [vmem:[%s7265_s6 + $0x31c] sm:$0xf]  ;;  %v4476_v56 = vld [vmem:[%s7265_s6 + $0x6ec] sm:$0xf0] }
 0x15c   : > { %vm1292_vm15 = vcmp.gt.f32.partialorder %v1283_v11, 0.0  ;;  %v1300_v54 = vmul.f32 0.2, %v1283_v11  ;;  %v1240_v7 = vpop.f32.mrf.mxu2  ;;  %v1254_v18 = vpop.f32.mrf.mxu3  ;;  %v4031_v14 = vor.u32 %v4680_v49, %v4028_v6  ;;  %v4082_v32 = vld [vmem:[%s7265_s6 + $0x3c0] sm:$0xf] }
 0x15d   : > { %v1241_v31 = vadd.f32 %v1240_v7, %v847_v55  ;;  %v3662_v55 = vld [vmem:[%s7265_s6 + $0x78] sm:$0xf]  ;;  %v4718_v7 = vld [vmem:[%s7265_s6 + $0x480] sm:$0xf0]  ;;  %v4697_v2 = vld [vmem:[%s7265_s6 + $0x3d8] sm:$0xf0] }
 0x15e   : > { %v1308_v52 = vsel %vm1292_vm15, %v1283_v11, %v1300_v54  ;;  %2866 = vmatpush.bf16.msra.mxu3 %v3943_v63  ;;  %v3663_v5 = vor.u32 %v4592_v36, %v3662_v55  ;;  %v4362_v11 = vld [vmem:[%s7265_s6 + $0x5f0] sm:$0xf]  ;;  %v4767_v63 = vld [vmem:[%s7265_s6 + $0x608] sm:$0xf0]  ;;  %v4166_v54 = vld [vmem:[%s7265_s6 + $0x468] sm:$0xf]  ;;  %v4083_v3 = vor.u32 %v4697_v2, %v4082_v32 }
 0x15f   : > { %v6273_v27 = vpack.c.bf16 %v1308_v52, %v1304_v45  ;;  %v1255_v12 = vadd.f32 %v1254_v18, %v1241_v31  ;;  %2851 = vmatpush.bf16.msra.mxu2 %v3747_v24  ;;  %v4000_v24 = vld [vmem:[%s7265_s6 + $0x334] sm:$0xf0]  ;;  %v4363_v57 = vor.u32 %v4767_v63, %v4362_v11  ;;  %v4624_v31 = vld [vmem:[%s7265_s6 + $0x194] sm:$0xf]  ;;  %v3804_v45 = vld [vmem:[%s7265_s6 + $0x1ac] sm:$0xf0]  ;;  %v4167_v8 = vor.u32 %v4718_v7, %v4166_v54 }
 0x160   : > { %v4003_v52 = vor.u32 %v4673_v30, %v4000_v24  ;;  %v4334_v18 = vld [vmem:[%s7265_s6 + $0x5b8] sm:$0xf]  ;;  %v3807_v26 = vor.u32 %v4624_v31, %v3804_v45  ;;  %v4278_v55 = vld [vmem:[%s7265_s6 + $0x548] sm:$0xf]  ;;  %v4746_v36 = vld [vmem:[%s7265_s6 + $0x560] sm:$0xf0] }
 0x161   : > { %vm1291_vm1 = vcmp.gt.f32.partialorder %v1255_v12, 0.0  ;;  %v1299_v60 = vmul.f32 0.2, %v1255_v12  ;;  %2787 = vmatmul.bf16.vlgmr.msrb.gmra.mxu1 %v6273_v27  ;;  %2815 = vmatmul.bf16.vlgmr.msrb.gmra.mxu3 %v6203_v16  ;;  %v3720_v49 = vld [vmem:[%s7265_s6 + $0x104] sm:$0xf0] }
 0x162   : > { %2867 = vmatpush.bf16.msra.mxu3 %v3915_v47  ;;  %2891 = vmatpush.bf16.msrb.mxu1 %v4475_v19  ;;  %v4760_v47 = vld [vmem:[%s7265_s6 + $0x5d0] sm:$0xf0]  ;;  %v3607_v19 = vor.u32 %v4578_v20, %v3606_v25  ;;  %v4645_v0 = vld [vmem:[%s7265_s6 + $0x23c] sm:$0xf]  ;;  %v4054_v11 = vld [vmem:[%s7265_s6 + $0x388] sm:$0xf] }
 0x163   : > { %v1307_v50 = vsel %vm1291_vm1, %v1255_v12, %v1299_v60  ;;  %2852 = vmatpush.bf16.msra.mxu2 %v3719_v1  ;;  %v4138_v12 = vld [vmem:[%s7265_s6 + $0x430] sm:$0xf]  ;;  %v4711_v1 = vld [vmem:[%s7265_s6 + $0x448] sm:$0xf0]  ;;  %v4335_v22 = vor.u32 %v4760_v47, %v4334_v18  ;;  %v4306_v60 = vld [vmem:[%s7265_s6 + $0x580] sm:$0xf]  ;;  %v3891_v25 = vor.u32 %v4645_v0, %v3888_v48 }
 0x164   : > { %v6304_v46 = vpack.c.bf16 %v1307_v50, %v1303_v38  ;;  %v3779_v38 = vor.u32 %v4617_v28, %v3776_v29  ;;  %v4110_v50 = vld [vmem:[%s7265_s6 + $0x3f8] sm:$0xf]  ;;  %v4307_v62 = vor.u32 %v4753_v33, %v4306_v60  ;;  %v4690_v63 = vld [vmem:[%s7265_s6 + $0x3a0] sm:$0xf0]  ;;  %v4736_v30 = vld [vmem:[%s7265_s6 + $0x514] sm:$0xf] }
 0x165   : > { %v4111_v35 = vor.u32 %v4704_v23, %v4110_v50  ;;  %v4252_v24 = vld [vmem:[%s7265_s6 + $0x52c] sm:$0xf0]  ;;  %v4638_v54 = vld [vmem:[%s7265_s6 + $0x204] sm:$0xf]  ;;  %v4055_v7 = vor.u32 %v4690_v63, %v4054_v11  ;;  %v4420_v45 = vld [vmem:[%s7265_s6 + $0x67c] sm:$0xf0] }
 0x166   : > { %2868 = vmatpush.bf16.msra.mxu3 %v3887_v37  ;;  %2892 = vmatpush.bf16.msrb.mxu1 %v4447_v13  ;;  %v4139_v37 = vor.u32 %v4711_v1, %v4138_v12  ;;  %v4659_v13 = vld [vmem:[%s7265_s6 + $0x2ac] sm:$0xf]  ;;  %v4778_v31 = vld [vmem:[%s7265_s6 + $0x664] sm:$0xf]  ;;  %v4255_v18 = vor.u32 %v4736_v30, %v4252_v24  ;;  %v4589_v47 = vld [vmem:[%s7265_s6 + $0x7c] sm:$0xf] }
 0x167   : > { %2773 = vmatmul.bf16.vlgmr.msrb.gmra.mxu0 %v6304_v46  ;;  %2801 = vmatmul.bf16.vlgmr.msrb.gmra.mxu2 %v6225_v39  ;;  %v4631_v12 = vld [vmem:[%s7265_s6 + $0x1cc] sm:$0xf]  ;;  %v3832_v1 = vld [vmem:[%s7265_s6 + $0x1e4] sm:$0xf0]  ;;  %v4034_v60 = vld [vmem:[%s7265_s6 + $0x358] sm:$0xf] }
 0x168   : > { %2853 = vmatpush.bf16.msra.mxu2 %v3691_v17  ;;  %2877 = vmatpush.bf16.msrb.mxu0 %v4251_v44  ;;  %v3748_v17 = vld [vmem:[%s7265_s6 + $0x13c] sm:$0xf0]  ;;  %v3947_v44 = vor.u32 %v4659_v13, %v3944_v42  ;;  %v4392_v28 = vld [vmem:[%s7265_s6 + $0x644] sm:$0xf0]  ;;  %v4684_v33 = vld [vmem:[%s7265_s6 + $0x370] sm:$0xf0]  ;;  %v3835_v50 = vor.u32 %v4631_v12, %v3832_v1 }
 0x169   : > { %v3751_v61 = vor.u32 %v4610_v43, %v3748_v17  ;;  %v3636_v13 = vld [vmem:[%s7265_s6 + $0x5c] sm:$0xf0]  ;;  %v4722_v42 = vld [vmem:[%s7265_s6 + $0x4a4] sm:$0xf]  ;;  %v4764_v43 = vld [vmem:[%s7265_s6 + $0x5f4] sm:$0xf] }
 0x16a   : > { %2869 = vmatpush.bf16.msra.mxu3 %v3859_v40  ;;  %2893 = vmatpush.bf16.msrb.mxu1 %v4419_v41  ;;  %v3916_v40 = vld [vmem:[%s7265_s6 + $0x28c] sm:$0xf0]  ;;  %v4792_v41 = vld [vmem:[%s7265_s6 + $0x6d4] sm:$0xf]  ;;  %v3810_v32 = vld [vmem:[%s7265_s6 + $0x198] sm:$0xf] }
 0x16b   : > { %v3919_v6 = vor.u32 %v4652_v34, %v3916_v40  ;;  %v4479_v51 = vor.u32 %v4792_v41, %v4476_v56  ;;  %v4364_v17 = vld [vmem:[%s7265_s6 + $0x60c] sm:$0xf0]  ;;  %v4677_v34 = vld [vmem:[%s7265_s6 + $0x338] sm:$0xf0]  ;;  %v3608_v40 = vld [vmem:[%s7265_s6 + $0x24] sm:$0xf0] }
 0x16c   : > { %2854 = vmatpush.bf16.msra.mxu2 %v3663_v5  ;;  %2878 = vmatpush.bf16.msrb.mxu0 %v4223_v58  ;;  %v4279_v5 = vor.u32 %v4746_v36, %v4278_v55  ;;  %v4603_v58 = vld [vmem:[%s7265_s6 + $0xec] sm:$0xf]  ;;  %v4006_v36 = vld [vmem:[%s7265_s6 + $0x320] sm:$0xf]  ;;  %v4168_v56 = vld [vmem:[%s7265_s6 + $0x484] sm:$0xf0] }
 0x16d   : > { %v4715_v41 = vld [vmem:[%s7265_s6 + $0x46c] sm:$0xf]  ;;  %v4628_v2 = vld [vmem:[%s7265_s6 + $0x1b0] sm:$0xf0]  ;;  %v3978_v0 = vld [vmem:[%s7265_s6 + $0x2e8] sm:$0xf] }
 0x16e   : > { %2870 = vmatpush.bf16.msra.mxu3 %v3831_v53  ;;  %2894 = vmatpush.bf16.msrb.mxu1 %v4391_v9  ;;  %v4785_v53 = vld [vmem:[%s7265_s6 + $0x69c] sm:$0xf]  ;;  %v4448_v9 = vld [vmem:[%s7265_s6 + $0x6b4] sm:$0xf0]  ;;  %v3811_v48 = vor.u32 %v4628_v2, %v3810_v32  ;;  %v3782_v11 = vld [vmem:[%s7265_s6 + $0x160] sm:$0xf] }
 0x16f   : > { %v4451_v20 = vor.u32 %v4785_v53, %v4448_v9  ;;  %v4708_v53 = vld [vmem:[%s7265_s6 + $0x434] sm:$0xf]  ;;  %v4140_v9 = vld [vmem:[%s7265_s6 + $0x44c] sm:$0xf0]  ;;  %v4621_v63 = vld [vmem:[%s7265_s6 + $0x178] sm:$0xf0] }
 0x170   : > { %2855 = vmatpush.bf16.msra.mxu2 %v3635_v10  ;;  %2879 = vmatpush.bf16.msrb.mxu0 %v4195_v15  ;;  %v4596_v10 = vld [vmem:[%s7265_s6 + $0xb4] sm:$0xf]  ;;  %v3692_v15 = vld [vmem:[%s7265_s6 + $0xcc] sm:$0xf0]  ;;  %v4308_v30 = vld [vmem:[%s7265_s6 + $0x59c] sm:$0xf0]  ;;  %v4143_v24 = vor.u32 %v4708_v53, %v4140_v9 }
 0x171   : > { %2843 = vmatmul.bf16.vlgmr.msra.gmra.mxu1 %v6273_v27  ;;  %2871 = vmatmul.bf16.vlgmr.msra.gmra.mxu3 %v6203_v16  ;;  %v4796_v12 = vld [vmem:[%s7265_s6 + $0x6f0] sm:$0xf0]  ;;  %v4635_v9 = vld [vmem:[%s7265_s6 + $0x1e8] sm:$0xf0] }
 0x172   : > { %2919 = vmatpush.bf16.msrb.mxu3 %v4031_v14  ;;  %2895 = vmatpush.bf16.msrb.mxu1 %v4363_v57  ;;  %v3723_v14 = vor.u32 %v4603_v58, %v3720_v49  ;;  %v3860_v57 = vld [vmem:[%s7265_s6 + $0x21c] sm:$0xf0]  ;;  %v4757_v58 = vld [vmem:[%s7265_s6 + $0x5bc] sm:$0xf]  ;;  %v4336_v49 = vld [vmem:[%s7265_s6 + $0x5d4] sm:$0xf0] }
 0x173   : > { %v3863_v21 = vor.u32 %v4638_v54, %v3860_v57  ;;  %v3783_v54 = vor.u32 %v4621_v63, %v3782_v11  ;;  %v4112_v57 = vld [vmem:[%s7265_s6 + $0x414] sm:$0xf0]  ;;  %v4775_v11 = vld [vmem:[%s7265_s6 + $0x648] sm:$0xf0] }
 0x174   : > { %2856 = vmatpush.bf16.msra.mxu2 %v3607_v19  ;;  %2880 = vmatpush.bf16.msrb.mxu0 %v4167_v8  ;;  %v3664_v19 = vld [vmem:[%s7265_s6 + $0x94] sm:$0xf0]  ;;  %v4729_v8 = vld [vmem:[%s7265_s6 + $0x4dc] sm:$0xf] }
 0x175   : > { %v3667_v29 = vor.u32 %v4589_v47, %v3664_v19  ;;  %v4743_v47 = vld [vmem:[%s7265_s6 + $0x54c] sm:$0xf]  ;;  %v4280_v19 = vld [vmem:[%s7265_s6 + $0x564] sm:$0xf0] }
 0x176   : > { %2920 = vmatpush.bf16.msrb.mxu3 %v4003_v52  ;;  %2896 = vmatpush.bf16.msrb.mxu1 %v4335_v22  ;;  %v3695_v52 = vor.u32 %v4596_v10, %v3692_v15  ;;  %v4771_v22 = vld [vmem:[%s7265_s6 + $0x62c] sm:$0xf]  ;;  %v4750_v15 = vld [vmem:[%s7265_s6 + $0x584] sm:$0xf] }
 0x177   : > { %2829 = vmatmul.bf16.vlgmr.msra.gmra.mxu0 %v6304_v46  ;;  %2857 = vmatmul.bf16.vlgmr.msra.gmra.mxu2 %v6225_v39  ;;  %v4395_v23 = vor.u32 %v4771_v22, %v4392_v28  ;;  %v4694_v22 = vld [vmem:[%s7265_s6 + $0x3c4] sm:$0xf]  ;;  %v4084_v28 = vld [vmem:[%s7265_s6 + $0x3dc] sm:$0xf0] }
 0x178   : > { %2905 = vmatpush.bf16.msrb.mxu2 %v3807_v26  ;;  %2881 = vmatpush.bf16.msrb.mxu0 %v4139_v37  ;;  %v4423_v26 = vor.u32 %v4778_v31, %v4420_v45  ;;  %v4582_v37 = vld [vmem:[%s7265_s6 + $0x44] sm:$0xf]  ;;  %v4311_v31 = vor.u32 %v4750_v15, %v4308_v30  ;;  %v3754_v45 = vld [vmem:[%s7265_s6 + $0x128] sm:$0xf]  ;;  %v4681_v15 = vld [vmem:[%s7265_s6 + $0x35c] sm:$0xf] }
 0x179   : > { %v4036_v30 = vld [vmem:[%s7265_s6 + $0x374] sm:$0xf0] }
 0x17a   : > { %2921 = vmatpush.bf16.msrb.mxu3 %v3975_v59  ;;  %2897 = vmatpush.bf16.msrb.mxu1 %v4307_v62  ;;  %v4227_v59 = vor.u32 %v4729_v8, %v4224_v4  ;;  %v4035_v62 = vor.u32 %v4684_v33, %v4034_v60  ;;  %v3922_v8 = vld [vmem:[%s7265_s6 + $0x278] sm:$0xf]  ;;  %v4607_v60 = vld [vmem:[%s7265_s6 + $0x108] sm:$0xf0] }
 0x17c   : > { %2906 = vmatpush.bf16.msrb.mxu2 %v3779_v38  ;;  %2882 = vmatpush.bf16.msrb.mxu0 %v4111_v35  ;;  %v4196_v38 = vld [vmem:[%s7265_s6 + $0x4bc] sm:$0xf0]  ;;  %v4575_v35 = vld [vmem:[%s7265_s6 + $0xc] sm:$0xf] }
 0x17d   : > { %v4199_v55 = vor.u32 %v4722_v42, %v4196_v38  ;;  %v4087_v42 = vor.u32 %v4694_v22, %v4084_v28  ;;  %v4649_v38 = vld [vmem:[%s7265_s6 + $0x258] sm:$0xf0]  ;;  %v3812_v22 = vld [vmem:[%s7265_s6 + $0x1b4] sm:$0xf0] }
 0x17e   : > { %2922 = vmatpush.bf16.msrb.mxu3 %v3947_v44  ;;  %2898 = vmatpush.bf16.msrb.mxu1 %v4279_v5  ;;  %v3639_v44 = vor.u32 %v4582_v37, %v3636_v13  ;;  %v4007_v5 = vor.u32 %v4677_v34, %v4006_v36  ;;  %v3894_v13 = vld [vmem:[%s7265_s6 + $0x240] sm:$0xf]  ;;  %v4258_v36 = vld [vmem:[%s7265_s6 + $0x518] sm:$0xf]  ;;  %v4740_v34 = vld [vmem:[%s7265_s6 + $0x530] sm:$0xf0] }
 0x17f   : > { %v4259_v2 = vor.u32 %v4740_v34, %v4258_v36  ;;  %v4314_v36 = vld [vmem:[%s7265_s6 + $0x588] sm:$0xf]  ;;  %v4754_v34 = vld [vmem:[%s7265_s6 + $0x5a0] sm:$0xf0] }
 0x180   : > { %2907 = vmatpush.bf16.msrb.mxu2 %v3751_v61  ;;  %2883 = vmatpush.bf16.msrb.mxu0 %v4083_v3  ;;  %v4367_v61 = vor.u32 %v4764_v43, %v4364_v17  ;;  %v4670_v3 = vld [vmem:[%s7265_s6 + $0x300] sm:$0xf0]  ;;  %v4687_v43 = vld [vmem:[%s7265_s6 + $0x38c] sm:$0xf]  ;;  %v4056_v17 = vld [vmem:[%s7265_s6 + $0x3a4] sm:$0xf0] }
 0x181   : > { %2899 = vmatmul.bf16.vlgmr.msrb.gmra.mxu1 %v6273_v27  ;;  %v3979_v10 = vor.u32 %v4670_v3, %v3978_v0  ;;  %v4733_v0 = vld [vmem:[%s7265_s6 + $0x4f8] sm:$0xf0] }
 0x182   : > { %2923 = vmatpush.bf16.msrb.mxu3 %v3919_v6  ;;  %2947 = vmatpush.bf16.msra.mxu1 %v4479_v51  ;;  %v3611_v6 = vor.u32 %v4575_v35, %v3608_v40  ;;  %v4171_v51 = vor.u32 %v4715_v41, %v4168_v56  ;;  %v3895_v35 = vor.u32 %v4649_v38, %v3894_v13  ;;  %v3866_v56 = vld [vmem:[%s7265_s6 + $0x208] sm:$0xf]  ;;  %v4667_v13 = vld [vmem:[%s7265_s6 + $0x2ec] sm:$0xf] }
 0x183   : > { %v4059_v41 = vor.u32 %v4687_v43, %v4056_v17  ;;  %v3980_v38 = vld [vmem:[%s7265_s6 + $0x304] sm:$0xf0]  ;;  %v3784_v43 = vld [vmem:[%s7265_s6 + $0x17c] sm:$0xf0] }
 0x184   : > { %2908 = vmatpush.bf16.msrb.mxu2 %v3723_v14  ;;  %2884 = vmatpush.bf16.msrb.mxu0 %v4055_v7  ;;  %v4339_v14 = vor.u32 %v4757_v58, %v4336_v49  ;;  %v4701_v7 = vld [vmem:[%s7265_s6 + $0x3fc] sm:$0xf]  ;;  %v4782_v58 = vld [vmem:[%s7265_s6 + $0x680] sm:$0xf0]  ;;  %v3670_v49 = vld [vmem:[%s7265_s6 + $0x80] sm:$0xf] }
 0x185   : > { %v4115_v4 = vor.u32 %v4701_v7, %v4112_v57 }
 0x186   : > { %2924 = vmatpush.bf16.msrb.mxu3 %v3891_v25  ;;  %2948 = vmatpush.bf16.msra.mxu1 %v4451_v20  ;;  %v3950_v25 = vld [vmem:[%s7265_s6 + $0x2b0] sm:$0xf]  ;;  %v4663_v20 = vld [vmem:[%s7265_s6 + $0x2c8] sm:$0xf0] }
 0x187   : > { %2885 = vmatmul.bf16.vlgmr.msrb.gmra.mxu0 %v6304_v46 }
 0x188   : > { %2909 = vmatpush.bf16.msrb.mxu2 %v3695_v52  ;;  %2933 = vmatpush.bf16.msra.mxu0 %v4255_v18  ;;  %v4614_v52 = vld [vmem:[%s7265_s6 + $0x140] sm:$0xf0]  ;;  %v3951_v18 = vor.u32 %v4663_v20, %v3950_v25  ;;  %v4202_v20 = vld [vmem:[%s7265_s6 + $0x4a8] sm:$0xf] }
 0x189   : > { %v3755_v1 = vor.u32 %v4614_v52, %v3754_v45  ;;  %v4586_v25 = vld [vmem:[%s7265_s6 + $0x60] sm:$0xf0]  ;;  %v4370_v45 = vld [vmem:[%s7265_s6 + $0x5f8] sm:$0xf]  ;;  %v4768_v52 = vld [vmem:[%s7265_s6 + $0x610] sm:$0xf0] }
 0x18a   : > { %2925 = vmatpush.bf16.msrb.mxu3 %v3863_v21  ;;  %2949 = vmatpush.bf16.msra.mxu1 %v4423_v26  ;;  %v4656_v21 = vld [vmem:[%s7265_s6 + $0x290] sm:$0xf0]  ;;  %v4482_v26 = vld [vmem:[%s7265_s6 + $0x6d8] sm:$0xf]  ;;  %v4371_v28 = vor.u32 %v4768_v52, %v4370_v45  ;;  %v4062_v45 = vld [vmem:[%s7265_s6 + $0x390] sm:$0xf] }
 0x18b   : > { %v3923_v33 = vor.u32 %v4656_v21, %v3922_v8  ;;  %v4483_v37 = vor.u32 %v4796_v12, %v4482_v26  ;;  %v4008_v8 = vld [vmem:[%s7265_s6 + $0x33c] sm:$0xf0]  ;;  %v4579_v21 = vld [vmem:[%s7265_s6 + $0x28] sm:$0xf0]  ;;  %v4174_v26 = vld [vmem:[%s7265_s6 + $0x470] sm:$0xf] }
 0x18c   : > { %2910 = vmatpush.bf16.msrb.mxu2 %v3667_v29  ;;  %2934 = vmatpush.bf16.msra.mxu0 %v4227_v59  ;;  %v4283_v29 = vor.u32 %v4743_v47, %v4280_v19  ;;  %v3726_v59 = vld [vmem:[%s7265_s6 + $0xf0] sm:$0xf]  ;;  %v4674_v19 = vld [vmem:[%s7265_s6 + $0x324] sm:$0xf]  ;;  %v4719_v12 = vld [vmem:[%s7265_s6 + $0x488] sm:$0xf0] }
 0x18d   : > { %v4691_v52 = vld [vmem:[%s7265_s6 + $0x3a8] sm:$0xf0] }
 0x18e   : > { %2926 = vmatpush.bf16.msrb.mxu3 %v3835_v50  ;;  %2950 = vmatpush.bf16.msra.mxu1 %v4395_v23  ;;  %v4454_v50 = vld [vmem:[%s7265_s6 + $0x6a0] sm:$0xf]  ;;  %v4789_v23 = vld [vmem:[%s7265_s6 + $0x6b8] sm:$0xf0] }
 0x18f   : > { %v4455_v40 = vor.u32 %v4789_v23, %v4454_v50  ;;  %v4146_v50 = vld [vmem:[%s7265_s6 + $0x438] sm:$0xf]  ;;  %v4712_v23 = vld [vmem:[%s7265_s6 + $0x450] sm:$0xf0] }
 0x190   : > { %2911 = vmatpush.bf16.msrb.mxu2 %v3639_v44  ;;  %2935 = vmatpush.bf16.msra.mxu0 %v4199_v55  ;;  %v3698_v44 = vld [vmem:[%s7265_s6 + $0xb8] sm:$0xf]  ;;  %v4600_v55 = vld [vmem:[%s7265_s6 + $0xd0] sm:$0xf0] }
 0x191   : > { %2927 = vmatmul.bf16.vlgmr.msrb.gmra.mxu3 %v6203_v16  ;;  %v3699_v32 = vor.u32 %v4600_v55, %v3698_v44  ;;  %v3983_v44 = vor.u32 %v4667_v13, %v3980_v38  ;;  %v4147_v55 = vor.u32 %v4712_v23, %v4146_v50  ;;  %v4232_v13 = vld [vmem:[%s7265_s6 + $0x4fc] sm:$0xf0]  ;;  %v4632_v38 = vld [vmem:[%s7265_s6 + $0x1d4] sm:$0xf] }
 0x192   : > { %2975 = vmatpush.bf16.msra.mxu3 %v4035_v62  ;;  %2951 = vmatpush.bf16.msra.mxu1 %v4367_v61  ;;  %v3727_v62 = vor.u32 %v4607_v60, %v3726_v59  ;;  %v4642_v61 = vld [vmem:[%s7265_s6 + $0x220] sm:$0xf0]  ;;  %v4175_v60 = vor.u32 %v4719_v12, %v4174_v26  ;;  %v4063_v26 = vor.u32 %v4691_v52, %v4062_v45 }
 0x193   : > { %v3867_v3 = vor.u32 %v4642_v61, %v3866_v56  ;;  %v4118_v56 = vld [vmem:[%s7265_s6 + $0x400] sm:$0xf]  ;;  %v4705_v61 = vld [vmem:[%s7265_s6 + $0x418] sm:$0xf0]  ;;  %v4622_v45 = vld [vmem:[%s7265_s6 + $0x180] sm:$0xf0] }
 0x194   : > { %2912 = vmatpush.bf16.msrb.mxu2 %v3611_v6  ;;  %2936 = vmatpush.bf16.msra.mxu0 %v4171_v51  ;;  %v4593_v6 = vld [vmem:[%s7265_s6 + $0x98] sm:$0xf0]  ;;  %v4230_v51 = vld [vmem:[%s7265_s6 + $0x4e0] sm:$0xf] }
 0x195   : > { %v3671_v63 = vor.u32 %v4593_v6, %v3670_v49  ;;  %v4119_v6 = vor.u32 %v4705_v61, %v4118_v56 }
 0x196   : > { %2976 = vmatpush.bf16.msra.mxu3 %v4007_v5  ;;  %2952 = vmatpush.bf16.msra.mxu1 %v4339_v14  ;;  %v4426_v5 = vld [vmem:[%s7265_s6 + $0x668] sm:$0xf]  ;;  %v4398_v14 = vld [vmem:[%s7265_s6 + $0x630] sm:$0xf] }
 0x197   : > { %2913 = vmatmul.bf16.vlgmr.msrb.gmra.mxu2 %v6225_v39  ;;  %v4427_v53 = vor.u32 %v4782_v58, %v4426_v5  ;;  %v4399_v57 = vor.u32 %v4775_v11, %v4398_v14  ;;  %v4315_v5 = vor.u32 %v4754_v34, %v4314_v36  ;;  %v4286_v58 = vld [vmem:[%s7265_s6 + $0x550] sm:$0xf]  ;;  %v4090_v14 = vld [vmem:[%s7265_s6 + $0x3c8] sm:$0xf]  ;;  %v4698_v11 = vld [vmem:[%s7265_s6 + $0x3e0] sm:$0xf0] }
 0x198   : > { %2961 = vmatpush.bf16.msra.mxu2 %v3811_v48  ;;  %2937 = vmatpush.bf16.msra.mxu0 %v4143_v24  ;;  %v3838_v48 = vld [vmem:[%s7265_s6 + $0x1d0] sm:$0xf]  ;;  %v3642_v24 = vld [vmem:[%s7265_s6 + $0x48] sm:$0xf]  ;;  %v4685_v36 = vld [vmem:[%s7265_s6 + $0x378] sm:$0xf0] }
 0x199   : > { %v3839_v7 = vor.u32 %v4635_v9, %v3838_v48  ;;  %v4484_v9 = vld [vmem:[%s7265_s6 + $0x6f4] sm:$0xf0]  ;;  %v4583_v34 = vld [vmem:[%s7265_s6 + $0x4c] sm:$0xf] }
 0x19a   : > { %2977 = vmatpush.bf16.msra.mxu3 %v3979_v10  ;;  %2953 = vmatpush.bf16.msra.mxu1 %v4311_v31  ;;  %v4231_v10 = vor.u32 %v4733_v0, %v4230_v51  ;;  %v4039_v31 = vor.u32 %v4681_v15, %v4036_v30  ;;  %v4747_v51 = vld [vmem:[%s7265_s6 + $0x568] sm:$0xf0]  ;;  %v4653_v0 = vld [vmem:[%s7265_s6 + $0x27c] sm:$0xf] }
 0x19b   : > { %v4287_v15 = vor.u32 %v4747_v51, %v4286_v58  ;;  %v4678_v51 = vld [vmem:[%s7265_s6 + $0x340] sm:$0xf0] }
 0x19c   : > { %2962 = vmatpush.bf16.msra.mxu2 %v3783_v54  ;;  %2938 = vmatpush.bf16.msra.mxu0 %v4115_v4  ;;  %v4726_v54 = vld [vmem:[%s7265_s6 + $0x4c0] sm:$0xf0]  ;;  %v3614_v4 = vld [vmem:[%s7265_s6 + $0x10] sm:$0xf] }
 0x19d   : > { %v4203_v47 = vor.u32 %v4726_v54, %v4202_v20  ;;  %v3615_v59 = vor.u32 %v4579_v21, %v3614_v4  ;;  %v3896_v20 = vld [vmem:[%s7265_s6 + $0x25c] sm:$0xf0]  ;;  %v4091_v54 = vor.u32 %v4698_v11, %v4090_v14  ;;  %v4629_v14 = vld [vmem:[%s7265_s6 + $0x1b8] sm:$0xf0] }
 0x19e   : > { %2978 = vmatpush.bf16.msra.mxu3 %v3951_v18  ;;  %2954 = vmatpush.bf16.msra.mxu1 %v4283_v29  ;;  %v3643_v18 = vor.u32 %v4586_v25, %v3642_v24  ;;  %v4011_v29 = vor.u32 %v4674_v19, %v4008_v8  ;;  %v4646_v25 = vld [vmem:[%s7265_s6 + $0x244] sm:$0xf]  ;;  %v4737_v19 = vld [vmem:[%s7265_s6 + $0x51c] sm:$0xf]  ;;  %v4260_v8 = vld [vmem:[%s7265_s6 + $0x534] sm:$0xf0] }
 0x19f   : > { %v3899_v4 = vor.u32 %v4646_v25, %v3896_v20  ;;  %v3986_v25 = vld [vmem:[%s7265_s6 + $0x2f0] sm:$0xf] }
 0x1a0   : > { %2963 = vmatpush.bf16.msra.mxu2 %v3755_v1  ;;  %2939 = vmatpush.bf16.msra.mxu0 %v4087_v42  ;;  %v4625_v1 = vld [vmem:[%s7265_s6 + $0x19c] sm:$0xf] }
 0x1a1   : > { %2955 = vmatmul.bf16.vlgmr.msra.gmra.mxu1 %v6273_v27  ;;  %v3815_v42 = vor.u32 %v4625_v1, %v3812_v22  ;;  %v4639_v1 = vld [vmem:[%s7265_s6 + $0x20c] sm:$0xf]  ;;  %v3868_v22 = vld [vmem:[%s7265_s6 + $0x224] sm:$0xf0] }
 0x1a2   : > { %2979 = vmatpush.bf16.msra.mxu3 %v3923_v33  ;;  %3003 = vmatpush.bf16.msrb.mxu1 %v4483_v37  ;;  %v4342_v33 = vld [vmem:[%s7265_s6 + $0x5c0] sm:$0xf]  ;;  %v4761_v37 = vld [vmem:[%s7265_s6 + $0x5d8] sm:$0xf0] }
 0x1a3   : > { %v4343_v17 = vor.u32 %v4761_v37, %v4342_v33  ;;  %v3672_v33 = vld [vmem:[%s7265_s6 + $0x9c] sm:$0xf0]  ;;  %v4730_v37 = vld [vmem:[%s7265_s6 + $0x4e4] sm:$0xf] }
 0x1a4   : > { %2964 = vmatpush.bf16.msra.mxu2 %v3727_v62  ;;  %2940 = vmatpush.bf16.msra.mxu0 %v4059_v41  ;;  %v4618_v62 = vld [vmem:[%s7265_s6 + $0x164] sm:$0xf]  ;;  %v3952_v41 = vld [vmem:[%s7265_s6 + $0x2cc] sm:$0xf0] }
 0x1a6   : > { %2980 = vmatpush.bf16.msra.mxu3 %v3895_v35  ;;  %3004 = vmatpush.bf16.msrb.mxu1 %v4455_v40  ;;  %v4660_v35 = vld [vmem:[%s7265_s6 + $0x2b4] sm:$0xf]  ;;  %v3787_v40 = vor.u32 %v4618_v62, %v3784_v43  ;;  %v3840_v62 = vld [vmem:[%s7265_s6 + $0x1ec] sm:$0xf0] }
 0x1a7   : > { %2941 = vmatmul.bf16.vlgmr.msra.gmra.mxu0 %v6304_v46  ;;  %v3955_v49 = vor.u32 %v4660_v35, %v3952_v41  ;;  %v4772_v43 = vld [vmem:[%s7265_s6 + $0x634] sm:$0xf]  ;;  %v3644_v35 = vld [vmem:[%s7265_s6 + $0x64] sm:$0xf0]  ;;  %v3843_v56 = vor.u32 %v4632_v38, %v3840_v62  ;;  %v4695_v62 = vld [vmem:[%s7265_s6 + $0x3cc] sm:$0xf] }
 0x1a8   : > { %2965 = vmatpush.bf16.msra.mxu2 %v3699_v32  ;;  %2989 = vmatpush.bf16.msrb.mxu0 %v4259_v2  ;;  %v4611_v32 = vld [vmem:[%s7265_s6 + $0x12c] sm:$0xf]  ;;  %v3756_v2 = vld [vmem:[%s7265_s6 + $0x144] sm:$0xf0]  ;;  %v3647_v58 = vor.u32 %v4583_v34, %v3644_v35 }
 0x1a9   : > { %v3759_v48 = vor.u32 %v4611_v32, %v3756_v2  ;;  %v4204_v41 = vld [vmem:[%s7265_s6 + $0x4c4] sm:$0xf0]  ;;  %v4765_v2 = vld [vmem:[%s7265_s6 + $0x5fc] sm:$0xf] }
 0x1aa   : > { %2981 = vmatpush.bf16.msra.mxu3 %v3867_v3  ;;  %3005 = vmatpush.bf16.msrb.mxu1 %v4427_v53  ;;  %v3924_v3 = vld [vmem:[%s7265_s6 + $0x294] sm:$0xf0]  ;;  %v4793_v53 = vld [vmem:[%s7265_s6 + $0x6dc] sm:$0xf]  ;;  %v3902_v35 = vld [vmem:[%s7265_s6 + $0x248] sm:$0xf] }
 0x1ab   : > { %v3927_v30 = vor.u32 %v4653_v0, %v3924_v3  ;;  %v4487_v24 = vor.u32 %v4793_v53, %v4484_v9  ;;  %v4576_v0 = vld [vmem:[%s7265_s6 + $0x14] sm:$0xf]  ;;  %v3616_v3 = vld [vmem:[%s7265_s6 + $0x2c] sm:$0xf0]  ;;  %v3818_v9 = vld [vmem:[%s7265_s6 + $0x1a0] sm:$0xf] }
 0x1ac   : > { %2966 = vmatpush.bf16.msra.mxu2 %v3671_v63  ;;  %2990 = vmatpush.bf16.msrb.mxu0 %v4231_v10  ;;  %v4604_v63 = vld [vmem:[%s7265_s6 + $0xf4] sm:$0xf]  ;;  %v3728_v10 = vld [vmem:[%s7265_s6 + $0x10c] sm:$0xf0]  ;;  %v3819_v20 = vor.u32 %v4629_v14, %v3818_v9 }
 0x1ad   : > { %v4176_v53 = vld [vmem:[%s7265_s6 + $0x48c] sm:$0xf0] }
 0x1ae   : > { %2982 = vmatpush.bf16.msra.mxu3 %v3839_v7  ;;  %3006 = vmatpush.bf16.msrb.mxu1 %v4399_v57  ;;  %v3731_v7 = vor.u32 %v4604_v63, %v3728_v10  ;;  %v4786_v57 = vld [vmem:[%s7265_s6 + $0x6a4] sm:$0xf]  ;;  %v3619_v10 = vor.u32 %v4576_v0, %v3616_v3 }
 0x1b0   : > { %2967 = vmatpush.bf16.msra.mxu2 %v3643_v18  ;;  %2991 = vmatpush.bf16.msrb.mxu0 %v4203_v47  ;;  %v4597_v18 = vld [vmem:[%s7265_s6 + $0xbc] sm:$0xf]  ;;  %v3700_v47 = vld [vmem:[%s7265_s6 + $0xd4] sm:$0xf0] }
 0x1b1   : > { %2983 = vmatmul.bf16.vlgmr.msra.gmra.mxu3 %v6203_v16  ;;  %v3703_v12 = vor.u32 %v4597_v18, %v3700_v47 }
 0x1b2   : > { %3031 = vmatpush.bf16.msrb.mxu3 %v4039_v31  ;;  %3007 = vmatpush.bf16.msrb.mxu1 %v4371_v28  ;;  %v4456_v31 = vld [vmem:[%s7265_s6 + $0x6bc] sm:$0xf0]  ;;  %v4779_v28 = vld [vmem:[%s7265_s6 + $0x66c] sm:$0xf] }
 0x1b3   : > { %v4459_v21 = vor.u32 %v4786_v57, %v4456_v31  ;;  %v4148_v57 = vld [vmem:[%s7265_s6 + $0x454] sm:$0xf0]  ;;  %v3790_v31 = vld [vmem:[%s7265_s6 + $0x168] sm:$0xf] }
 0x1b4   : > { %2968 = vmatpush.bf16.msra.mxu2 %v3615_v59  ;;  %2992 = vmatpush.bf16.msrb.mxu0 %v4175_v60  ;;  %v4428_v59 = vld [vmem:[%s7265_s6 + $0x684] sm:$0xf0]  ;;  %v4590_v60 = vld [vmem:[%s7265_s6 + $0x84] sm:$0xf] }
 0x1b5   : > { %v4431_v50 = vor.u32 %v4779_v28, %v4428_v59  ;;  %v3675_v23 = vor.u32 %v4590_v60, %v3672_v33  ;;  %v4615_v28 = vld [vmem:[%s7265_s6 + $0x148] sm:$0xf0]  ;;  %v4744_v59 = vld [vmem:[%s7265_s6 + $0x554] sm:$0xf] }
 0x1b6   : > { %3032 = vmatpush.bf16.msrb.mxu3 %v4011_v29  ;;  %3008 = vmatpush.bf16.msrb.mxu1 %v4343_v17  ;;  %v4263_v29 = vor.u32 %v4737_v19, %v4260_v8  ;;  %v4400_v17 = vld [vmem:[%s7265_s6 + $0x64c] sm:$0xf0]  ;;  %v4751_v19 = vld [vmem:[%s7265_s6 + $0x58c] sm:$0xf]  ;;  %v4316_v8 = vld [vmem:[%s7265_s6 + $0x5a4] sm:$0xf0] }
 0x1b7   : > { %2969 = vmatmul.bf16.vlgmr.msra.gmra.mxu2 %v6225_v39  ;;  %v4403_v61 = vor.u32 %v4772_v43, %v4400_v17  ;;  %v4092_v43 = vld [vmem:[%s7265_s6 + $0x3e4] sm:$0xf0]  ;;  %v3734_v17 = vld [vmem:[%s7265_s6 + $0xf8] sm:$0xf] }
 0x1b8   : > { %3017 = vmatpush.bf16.msrb.mxu2 %v3815_v42  ;;  %2993 = vmatpush.bf16.msrb.mxu0 %v4147_v55  ;;  %v3871_v42 = vor.u32 %v4639_v1, %v3868_v22  ;;  %v4042_v55 = vld [vmem:[%s7265_s6 + $0x360] sm:$0xf]  ;;  %v3762_v22 = vld [vmem:[%s7265_s6 + $0x130] sm:$0xf] }
 0x1b9   : > { %v4043_v32 = vor.u32 %v4685_v36, %v4042_v55  ;;  %v4120_v1 = vld [vmem:[%s7265_s6 + $0x41c] sm:$0xf0]  ;;  %v3763_v38 = vor.u32 %v4615_v28, %v3762_v22  ;;  %v4210_v22 = vld [vmem:[%s7265_s6 + $0x4b0] sm:$0xf]  ;;  %v4727_v28 = vld [vmem:[%s7265_s6 + $0x4c8] sm:$0xf0] }
 0x1ba   : > { %3033 = vmatpush.bf16.msrb.mxu3 %v3983_v44  ;;  %3009 = vmatpush.bf16.msrb.mxu1 %v4315_v5  ;;  %v4235_v44 = vor.u32 %v4730_v37, %v4232_v13  ;;  %v4372_v5 = vld [vmem:[%s7265_s6 + $0x614] sm:$0xf0]  ;;  %v4288_v37 = vld [vmem:[%s7265_s6 + $0x56c] sm:$0xf0]  ;;  %v3930_v13 = vld [vmem:[%s7265_s6 + $0x280] sm:$0xf] }
 0x1bb   : > { %v4375_v11 = vor.u32 %v4765_v2, %v4372_v5  ;;  %v4291_v55 = vor.u32 %v4744_v59, %v4288_v37  ;;  %v4688_v2 = vld [vmem:[%s7265_s6 + $0x394] sm:$0xf]  ;;  %v4064_v5 = vld [vmem:[%s7265_s6 + $0x3ac] sm:$0xf0]  ;;  %v4378_v37 = vld [vmem:[%s7265_s6 + $0x600] sm:$0xf] }
 0x1bc   : > { %3018 = vmatpush.bf16.msrb.mxu2 %v3787_v40  ;;  %2994 = vmatpush.bf16.msrb.mxu0 %v4119_v6  ;;  %v4723_v40 = vld [vmem:[%s7265_s6 + $0x4ac] sm:$0xf]  ;;  %v4014_v6 = vld [vmem:[%s7265_s6 + $0x328] sm:$0xf]  ;;  %v4067_v14 = vor.u32 %v4688_v2, %v4064_v5  ;;  %v4154_v2 = vld [vmem:[%s7265_s6 + $0x440] sm:$0xf] }
 0x1bd   : > { %v4015_v63 = vor.u32 %v4678_v51, %v4014_v6  ;;  %v4266_v6 = vld [vmem:[%s7265_s6 + $0x520] sm:$0xf]  ;;  %v4741_v51 = vld [vmem:[%s7265_s6 + $0x538] sm:$0xf0] }
 0x1be   : > { %3034 = vmatpush.bf16.msrb.mxu3 %v3955_v49  ;;  %3010 = vmatpush.bf16.msrb.mxu1 %v4287_v15  ;;  %v4207_v49 = vor.u32 %v4723_v40, %v4204_v41  ;;  %v4650_v40 = vld [vmem:[%s7265_s6 + $0x260] sm:$0xf0]  ;;  %v4095_v41 = vor.u32 %v4695_v62, %v4092_v43  ;;  %v4182_v43 = vld [vmem:[%s7265_s6 + $0x478] sm:$0xf]  ;;  %v4713_v5 = vld [vmem:[%s7265_s6 + $0x458] sm:$0xf0] }
 0x1bf   : > { %v3903_v0 = vor.u32 %v4650_v40, %v3902_v35 }
 0x1c0   : > { %3019 = vmatpush.bf16.msrb.mxu2 %v3759_v48  ;;  %2995 = vmatpush.bf16.msrb.mxu0 %v4091_v54  ;;  %v4716_v48 = vld [vmem:[%s7265_s6 + $0x474] sm:$0xf]  ;;  %v4671_v54 = vld [vmem:[%s7265_s6 + $0x308] sm:$0xf0] }
 0x1c1   : > { %3011 = vmatmul.bf16.vlgmr.msrb.gmra.mxu1 %v6273_v27  ;;  %v4179_v15 = vor.u32 %v4716_v48, %v4176_v53  ;;  %v3987_v18 = vor.u32 %v4671_v54, %v3986_v25  ;;  %v7083_v48 = vld [vmem:[%s7266_s7] sm:$0x7f]  ;;  %v3678_v25 = vld [vmem:[%s7265_s6 + $0x88] sm:$0xf] }
 0x1c2   : > { %3035 = vmatpush.bf16.msrb.mxu3 %v3927_v30  ;;  %3059 = vmatpush.bf16.msra.mxu1 %v4487_v24  ;;  %v4758_v30 = vld [vmem:[%s7265_s6 + $0x5c4] sm:$0xf]  ;;  %v4344_v24 = vld [vmem:[%s7265_s6 + $0x5dc] sm:$0xf0]  ;;  %v1571_v54 = vperm.slane %v7083_v48, 0 }
 0x1c3   : > { %v4347_v52 = vor.u32 %v4758_v30, %v4344_v24  ;;  %v4267_v30 = vor.u32 %v4741_v51, %v4266_v6  ;;  %v4783_v24 = vld [vmem:[%s7265_s6 + $0x688] sm:$0xf0]  ;;  %v4155_v6 = vor.u32 %v4713_v5, %v4154_v2  ;;  %v1574_v5 = vperm.slane %v7083_v48, 3 }
 0x1c4   : > { %3020 = vmatpush.bf16.msrb.mxu2 %v3731_v7  ;;  %2996 = vmatpush.bf16.msrb.mxu0 %v4063_v26  ;;  %v4709_v7 = vld [vmem:[%s7265_s6 + $0x43c] sm:$0xf]  ;;  %v4664_v26 = vld [vmem:[%s7265_s6 + $0x2d0] sm:$0xf0]  ;;  %v4755_v51 = vld [vmem:[%s7265_s6 + $0x5a8] sm:$0xf0] }
 0x1c5   : > { %v4151_v47 = vor.u32 %v4709_v7, %v4148_v57  ;;  %v4238_v7 = vld [vmem:[%s7265_s6 + $0x4e8] sm:$0xf]  ;;  %v4734_v57 = vld [vmem:[%s7265_s6 + $0x500] sm:$0xf0] }
 0x1c6   : > { %3036 = vmatpush.bf16.msrb.mxu3 %v3899_v4  ;;  %3060 = vmatpush.bf16.msra.mxu1 %v4459_v21  ;;  %v3958_v4 = vld [vmem:[%s7265_s6 + $0x2b8] sm:$0xf]  ;;  %v3791_v21 = vor.u32 %v4622_v45, %v3790_v31 }
 0x1c7   : > { %2997 = vmatmul.bf16.vlgmr.msrb.gmra.mxu0 %v6304_v46  ;;  %v3959_v60 = vor.u32 %v4664_v26, %v3958_v4  ;;  %v4239_v4 = vor.u32 %v4734_v57, %v4238_v7  ;;  %v3650_v26 = vld [vmem:[%s7265_s6 + $0x50] sm:$0xf]  ;;  %v4699_v7 = vld [vmem:[%s7265_s6 + $0x3e8] sm:$0xf0] }
 0x1c8   : > { %3021 = vmatpush.bf16.msrb.mxu2 %v3703_v12  ;;  %3045 = vmatpush.bf16.msra.mxu0 %v4263_v29  ;;  %v4702_v12 = vld [vmem:[%s7265_s6 + $0x404] sm:$0xf]  ;;  %v4319_v29 = vor.u32 %v4751_v19, %v4316_v8  ;;  %v4406_v19 = vld [vmem:[%s7265_s6 + $0x638] sm:$0xf] }
 0x1c9   : > { %v4123_v33 = vor.u32 %v4702_v12, %v4120_v1  ;;  %v4587_v12 = vld [vmem:[%s7265_s6 + $0x68] sm:$0xf0] }
 0x1ca   : > { %3037 = vmatpush.bf16.msrb.mxu3 %v3871_v42  ;;  %3061 = vmatpush.bf16.msra.mxu1 %v4431_v50  ;;  %v4657_v42 = vld [vmem:[%s7265_s6 + $0x298] sm:$0xf0]  ;;  %v4490_v50 = vld [vmem:[%s7265_s6 + $0x6e0] sm:$0xf] }
 0x1cb   : > { %v3931_v36 = vor.u32 %v4657_v42, %v3930_v13  ;;  %v4211_v13 = vor.u32 %v4727_v28, %v4210_v22  ;;  %v4769_v42 = vld [vmem:[%s7265_s6 + $0x618] sm:$0xf0] }
 0x1cc   : > { %3022 = vmatpush.bf16.msrb.mxu2 %v3675_v23  ;;  %3046 = vmatpush.bf16.msra.mxu0 %v4235_v44  ;;  %v4797_v23 = vld [vmem:[%s7265_s6 + $0x6f8] sm:$0xf0]  ;;  %v4608_v44 = vld [vmem:[%s7265_s6 + $0x110] sm:$0xf0] }
 0x1cd   : > { %v4491_v34 = vor.u32 %v4797_v23, %v4490_v50  ;;  %v4580_v50 = vld [vmem:[%s7265_s6 + $0x30] sm:$0xf0] }
 0x1ce   : > { %3038 = vmatpush.bf16.msrb.mxu3 %v3843_v56  ;;  %3062 = vmatpush.bf16.msra.mxu1 %v4403_v61  ;;  %v3735_v56 = vor.u32 %v4608_v44, %v3734_v17  ;;  %v4462_v61 = vld [vmem:[%s7265_s6 + $0x6a8] sm:$0xf]  ;;  %v4720_v17 = vld [vmem:[%s7265_s6 + $0x490] sm:$0xf0] }
 0x1cf   : > { %v4183_v40 = vor.u32 %v4720_v17, %v4182_v43 }
 0x1d0   : > { %3023 = vmatpush.bf16.msrb.mxu2 %v3647_v58  ;;  %3047 = vmatpush.bf16.msra.mxu0 %v4207_v49  ;;  %v3706_v58 = vld [vmem:[%s7265_s6 + $0xc0] sm:$0xf]  ;;  %v4601_v49 = vld [vmem:[%s7265_s6 + $0xd8] sm:$0xf0] }
 0x1d1   : > { %3039 = vmatmul.bf16.vlgmr.msrb.gmra.mxu3 %v6203_v16 }
 0x1d2   : > { %3087 = vmatpush.bf16.msra.mxu3 %v4043_v32  ;;  %3063 = vmatpush.bf16.msra.mxu1 %v4375_v11  ;;  %v4790_v32 = vld [vmem:[%s7265_s6 + $0x6c0] sm:$0xf0]  ;;  %v3707_v11 = vor.u32 %v4601_v49, %v3706_v58 }
 0x1d3   : > { %v4463_v3 = vor.u32 %v4790_v32, %v4462_v61 }
 0x1d4   : > { %3024 = vmatpush.bf16.msrb.mxu2 %v3619_v10  ;;  %3048 = vmatpush.bf16.msra.mxu0 %v4179_v15  ;;  %v2760_v53 = vpop.f32.mrf.mxu3  ;;  %v4643_v10 = vld [vmem:[%s7265_s6 + $0x228] sm:$0xf0]  ;;  %v4434_v15 = vld [vmem:[%s7265_s6 + $0x670] sm:$0xf] }
 0x1d5   : > { %v4435_v45 = vor.u32 %v4783_v24, %v4434_v15  ;;  %v4748_v24 = vld [vmem:[%s7265_s6 + $0x570] sm:$0xf0] }
 0x1d6   : > { %3088 = vmatpush.bf16.msra.mxu3 %v4015_v63  ;;  %3064 = vmatpush.bf16.msra.mxu1 %v4347_v52  ;;  %v3874_v63 = vld [vmem:[%s7265_s6 + $0x210] sm:$0xf] }
 0x1d7   : > { %3025 = vmatmul.bf16.vlgmr.msrb.gmra.mxu2 %v6225_v39  ;;  %v3875_v31 = vor.u32 %v4643_v10, %v3874_v63 }
 0x1d8   : > { %3073 = vmatpush.bf16.msra.mxu2 %v3819_v20  ;;  %3049 = vmatpush.bf16.msra.mxu0 %v4151_v47  ;;  %v4594_v20 = vld [vmem:[%s7265_s6 + $0xa0] sm:$0xf0]  ;;  %v4636_v47 = vld [vmem:[%s7265_s6 + $0x1f0] sm:$0xf0] }
 0x1d9   : > { %v2746_v9 = vpop.f32.mrf.mxu2  ;;  %v3679_v52 = vor.u32 %v4594_v20, %v3678_v25 }
 0x1da   : > { %3089 = vmatpush.bf16.msra.mxu3 %v3987_v18  ;;  %3065 = vmatpush.bf16.msra.mxu1 %v4319_v29  ;;  %v3846_v18 = vld [vmem:[%s7265_s6 + $0x1d8] sm:$0xf]  ;;  %v2747_v1 = vadd.f32 %v2746_v9, %v1571_v54  ;;  %v4706_v9 = vld [vmem:[%s7265_s6 + $0x420] sm:$0xf0] }
 0x1db   : > { %v3847_v29 = vor.u32 %v4636_v47, %v3846_v18  ;;  %v4070_v47 = vld [vmem:[%s7265_s6 + $0x398] sm:$0xf] }
 0x1dc   : > { %3074 = vmatpush.bf16.msra.mxu2 %v3791_v21  ;;  %3050 = vmatpush.bf16.msra.mxu0 %v4123_v33  ;;  %v4776_v21 = vld [vmem:[%s7265_s6 + $0x650] sm:$0xf0]  ;;  %v3651_v33 = vor.u32 %v4587_v12, %v3650_v26  ;;  %v2762_v23 = vpop.f32.mrf.mxu3  ;;  %v2761_v62 = vadd.f32 %v2760_v53, %v2747_v1  ;;  %v4126_v53 = vld [vmem:[%s7265_s6 + $0x408] sm:$0xf] }
 0x1dd   : > { %v4407_v59 = vor.u32 %v4776_v21, %v4406_v19  ;;  %v4127_v15 = vor.u32 %v4706_v9, %v4126_v53  ;;  %v4692_v19 = vld [vmem:[%s7265_s6 + $0x3b0] sm:$0xf0] }
 0x1de   : > { %3090 = vmatpush.bf16.msra.mxu3 %v3959_v60  ;;  %3066 = vmatpush.bf16.msra.mxu1 %v4291_v55  ;;  %v2788_v8 = vpop.f32.mrf.mxu1  ;;  %v4071_v21 = vor.u32 %v4692_v19, %v4070_v47 }
 0x1e0   : > { %3075 = vmatpush.bf16.msra.mxu2 %v3763_v38  ;;  %3051 = vmatpush.bf16.msra.mxu0 %v4095_v41  ;;  %v3622_v38 = vld [vmem:[%s7265_s6 + $0x18] sm:$0xf]  ;;  %v4350_v41 = vld [vmem:[%s7265_s6 + $0x5c8] sm:$0xf] }
 0x1e1   : > { %3067 = vmatmul.bf16.vlgmr.msra.gmra.mxu1 %v6273_v27  ;;  %v2748_v60 = vpop.f32.mrf.mxu2 }
 0x1e2   : > { %3091 = vmatpush.bf16.msra.mxu3 %v3931_v36  ;;  %3115 = vmatpush.bf16.msrb.mxu1 %v4491_v34  ;;  %v4379_v36 = vor.u32 %v4769_v42, %v4378_v37  ;;  %v3623_v34 = vor.u32 %v4580_v50, %v3622_v38  ;;  %v2749_v61 = vadd.f32 %v2748_v60, %v1571_v54  ;;  %v1573_v60 = vperm.slane %v7083_v48, 2 }
 0x1e4   : > { %3076 = vmatpush.bf16.msra.mxu2 %v3735_v56  ;;  %3052 = vmatpush.bf16.msra.mxu0 %v4067_v14  ;;  %v2774_v44 = vpop.f32.mrf.mxu0  ;;  %v4762_v56 = vld [vmem:[%s7265_s6 + $0x5e0] sm:$0xf0] }
 0x1e5   : > { %v2775_v55 = vadd.f32 %v2774_v44, %v2761_v62  ;;  %v4351_v58 = vor.u32 %v4762_v56, %v4350_v41 }
 0x1e6   : > { %3092 = vmatpush.bf16.msra.mxu3 %v3903_v0  ;;  %3116 = vmatpush.bf16.msrb.mxu1 %v4463_v3  ;;  %v2790_v35 = vpop.f32.mrf.mxu1  ;;  %v1572_v0 = vperm.slane %v7083_v48, 1  ;;  %v2763_v3 = vadd.f32 %v2762_v23, %v2749_v61 }
 0x1e7   : > { %3053 = vmatmul.bf16.vlgmr.msra.gmra.mxu0 %v6304_v46  ;;  %v2789_v32 = vadd.f32 %v2788_v8, %v2775_v55 }
 0x1e8   : > { %3077 = vmatpush.bf16.msra.mxu2 %v3707_v11  ;;  %3101 = vmatpush.bf16.msrb.mxu0 %v4267_v30  ;;  %v2816_v11 = vpop.f32.mrf.mxu3  ;;  %v4294_v30 = vld [vmem:[%s7265_s6 + $0x558] sm:$0xf] }
 0x1e9   : > { %4896 = vtanh.f32 %v2789_v32 }
 0x1ea   : > { %3093 = vmatpush.bf16.msra.mxu3 %v3875_v31  ;;  %3117 = vmatpush.bf16.msrb.mxu1 %v4435_v45  ;;  %v2802_v49 = vpop.f32.mrf.mxu2  ;;  %v4295_v31 = vor.u32 %v4748_v24, %v4294_v30 }
 0x1eb   : > { %v2803_v20 = vadd.f32 %v2802_v49, %v1572_v0 }
 0x1ec   : > { %3078 = vmatpush.bf16.msra.mxu2 %v3679_v52  ;;  %3102 = vmatpush.bf16.msrb.mxu0 %v4239_v4  ;;  %v2776_v14 = vpop.f32.mrf.mxu0 }
 0x1ed   : > { %v2777_v63 = vadd.f32 %v2776_v14, %v2763_v3  ;;  %v2817_v18 = vadd.f32 %v2816_v11, %v2803_v20 }
 0x1ee   : > { %3094 = vmatpush.bf16.msra.mxu3 %v3847_v29  ;;  %3118 = vmatpush.bf16.msrb.mxu1 %v4407_v59  ;;  %v2844_v57 = vpop.f32.mrf.mxu1 }
 0x1ef   : > { %v4897_v25 = vpop.eup %4896  ;;  %v2791_v54 = vadd.f32 %v2790_v35, %v2777_v63 }
 0x1f0   : > { %3079 = vmatpush.bf16.msra.mxu2 %v3651_v33  ;;  %3103 = vmatpush.bf16.msrb.mxu0 %v4211_v13  ;;  %3143 = vst [vmem:[%s7196_s20] sm:$0xff] %v4897_v25  ;;  %v2818_v12 = vpop.f32.mrf.mxu3 }
 0x1f1   : > { %3095 = vmatmul.bf16.vlgmr.msra.gmra.mxu3 %v6203_v16  ;;  %v4322_v16 = vld [vmem:[%s7265_s6 + $0x590] sm:$0xf]  ;;  %4898 = vtanh.f32 %v2791_v54  ;;  %v1575_v54 = vperm.slane %v7083_v48, 4 }
 0x1f2   : > { %3119 = vmatpush.bf16.msrb.mxu1 %v4379_v36  ;;  %v4323_v10 = vor.u32 %v4755_v51, %v4322_v16  ;;  %v2804_v45 = vpop.f32.mrf.mxu2 }
 0x1f3   : > { %v2805_v1 = vadd.f32 %v2804_v45, %v1572_v0 }
 0x1f4   : > { %3080 = vmatpush.bf16.msra.mxu2 %v3623_v34  ;;  %3104 = vmatpush.bf16.msrb.mxu0 %v4183_v40  ;;  %v2830_v8 = vpop.f32.mrf.mxu0 }
 0x1f5   : > { %v2831_v4 = vadd.f32 %v2830_v8, %v2817_v18  ;;  %v2819_v59 = vadd.f32 %v2818_v12, %v2805_v1 }
 0x1f6   : > { %3120 = vmatpush.bf16.msrb.mxu1 %v4351_v58  ;;  %v2846_v28 = vpop.f32.mrf.mxu1 }
 0x1f7   : > { %3081 = vmatmul.bf16.vlgmr.msra.gmra.mxu2 %v6225_v39  ;;  %v4098_v39 = vld [vmem:[%s7265_s6 + $0x3d0] sm:$0xf]  ;;  %v4899_v26 = vpop.eup %4898  ;;  %v2845_v22 = vadd.f32 %v2844_v57, %v2831_v4 }
 0x1f8   : > { %3105 = vmatpush.bf16.msrb.mxu0 %v4155_v6  ;;  %v4099_v52 = vor.u32 %v4699_v7, %v4098_v39  ;;  %3151 = vst [vmem:[%s7196_s20 + $0x38] sm:$0xff] %v4899_v26  ;;  %v2872_v50 = vpop.f32.mrf.mxu3 }
 0x1f9   : > { %4900 = vtanh.f32 %v2845_v22 }
 0x1fa   : > { %3121 = vmatpush.bf16.msrb.mxu1 %v4323_v10  ;;  %v2858_v29 = vpop.f32.mrf.mxu2 }
 0x1fb   : > { %v2859_v38 = vadd.f32 %v2858_v29, %v1573_v60 }
 0x1fc   : > { %3106 = vmatpush.bf16.msrb.mxu0 %v4127_v15  ;;  %v2832_v33 = vpop.f32.mrf.mxu0 }
 0x1fd   : > { %v2833_v37 = vadd.f32 %v2832_v33, %v2819_v59  ;;  %v1576_v59 = vperm.slane %v7083_v48, 5 }
 0x1fe   : > { %3122 = vmatpush.bf16.msrb.mxu1 %v4295_v31  ;;  %v2900_v23 = vpop.f32.mrf.mxu1 }
 0x1ff   : > { %v4901_v13 = vpop.eup %4900  ;;  %v2847_v42 = vadd.f32 %v2846_v28, %v2833_v37 }
 0x200   : > { %3107 = vmatpush.bf16.msrb.mxu0 %v4099_v52  ;;  %3144 = vst [vmem:[%s7196_s20 + $0x8] sm:$0xff] %v4901_v13 }
 0x201   : > { %3123 = vmatmul.bf16.vlgmr.msrb.gmra.mxu1 %v6273_v27  ;;  %4902 = vtanh.f32 %v2847_v42  ;;  %v2873_v27 = vadd.f32 %v2872_v50, %v2859_v38 }
 0x202   : > { %v2860_v62 = vpop.f32.mrf.mxu2 }
 0x203   : > { %v2861_v55 = vadd.f32 %v2860_v62, %v1573_v60 }
 0x204   : > { %3108 = vmatpush.bf16.msrb.mxu0 %v4071_v21  ;;  %v2886_v43 = vpop.f32.mrf.mxu0 }
 0x205   : > { %v2887_v17 = vadd.f32 %v2886_v43, %v2873_v27 }
 0x206   : > { %v2902_v41 = vpop.f32.mrf.mxu1 }
 0x207   : > { %3109 = vmatmul.bf16.vlgmr.msrb.gmra.mxu0 %v6304_v46  ;;  %v4903_v44 = vpop.eup %4902  ;;  %v2901_v36 = vadd.f32 %v2900_v23, %v2887_v17  ;;  %v2874_v46 = vpop.f32.mrf.mxu3 }
 0x208   : > { %3152 = vst [vmem:[%s7196_s20 + $0x40] sm:$0xff] %v4903_v44  ;;  %v2875_v34 = vadd.f32 %v2874_v46, %v2861_v55 }
 0x209   : > { %4904 = vtanh.f32 %v2901_v36 }
 0x20c   : > { %v2888_v35 = vpop.f32.mrf.mxu0 }
 0x20d   : > { %v2889_v40 = vadd.f32 %v2888_v35, %v2875_v34 }
 0x20f   : > { %v4905_v56 = vpop.eup %4904  ;;  %v2903_v61 = vadd.f32 %v2902_v41, %v2889_v40  ;;  %v1577_v40 = vperm.slane %v7083_v48, 6 }
 0x210   : > { %3145 = vst [vmem:[%s7196_s20 + $0x10] sm:$0xff] %v4905_v56 }
 0x211   : > { %4906 = vtanh.f32 %v2903_v61 }
 0x214   : > { %v2928_v49 = vpop.f32.mrf.mxu3 }
 0x217   : > { %v4907_v2 = vpop.eup %4906 }
 0x218   : > { %3153 = vst [vmem:[%s7196_s20 + $0x48] sm:$0xff] %v4907_v2 }
 0x21a   : > { %v2914_v32 = vpop.f32.mrf.mxu2 }
 0x21b   : > { %v2915_v58 = vadd.f32 %v2914_v32, %v1574_v5 }
 0x21c   : > { %v2930_v14 = vpop.f32.mrf.mxu3 }
 0x21d   : > { %v2929_v16 = vadd.f32 %v2928_v49, %v2915_v58 }
 0x21e   : > { %v2956_v6 = vpop.f32.mrf.mxu1 }
 0x222   : > { %v2916_v51 = vpop.f32.mrf.mxu2 }
 0x223   : > { %v2917_v53 = vadd.f32 %v2916_v51, %v1574_v5 }
 0x224   : > { %v2942_v0 = vpop.f32.mrf.mxu0 }
 0x225   : > { %v2943_v3 = vadd.f32 %v2942_v0, %v2929_v16  ;;  %v2931_v11 = vadd.f32 %v2930_v14, %v2917_v53 }
 0x226   : > { %v2958_v15 = vpop.f32.mrf.mxu1 }
 0x227   : > { %v2957_v9 = vadd.f32 %v2956_v6, %v2943_v3 }
 0x229   : > { %4908 = vtanh.f32 %v2957_v9 }
 0x22c   : > { %v2944_v63 = vpop.f32.mrf.mxu0 }
 0x22d   : > { %v2945_v10 = vadd.f32 %v2944_v63, %v2931_v11 }
 0x22f   : > { %v4909_v30 = vpop.eup %4908  ;;  %v2959_v24 = vadd.f32 %v2958_v15, %v2945_v10 }
 0x230   : > { %3146 = vst [vmem:[%s7196_s20 + $0x18] sm:$0xff] %v4909_v30 }
 0x231   : > { %4910 = vtanh.f32 %v2959_v24 }
 0x234   : > { %v2984_v7 = vpop.f32.mrf.mxu3 }
 0x237   : > { %v4911_v25 = vpop.eup %4910 }
 0x238   : > { %3154 = vst [vmem:[%s7196_s20 + $0x50] sm:$0xff] %v4911_v25 }
 0x23a   : > { %v2970_v20 = vpop.f32.mrf.mxu2 }
 0x23b   : > { %v2971_v39 = vadd.f32 %v2970_v20, %v1575_v54 }
 0x23c   : > { %v2986_v8 = vpop.f32.mrf.mxu3 }
 0x23d   : > { %v2985_v31 = vadd.f32 %v2984_v7, %v2971_v39 }
 0x23e   : > { %v3012_v57 = vpop.f32.mrf.mxu1 }
 0x242   : > { %v2972_v45 = vpop.f32.mrf.mxu2 }
 0x243   : > { %v2973_v47 = vadd.f32 %v2972_v45, %v1575_v54 }
 0x244   : > { %v2998_v52 = vpop.f32.mrf.mxu0 }
 0x245   : > { %v2999_v18 = vadd.f32 %v2998_v52, %v2985_v31  ;;  %v2987_v4 = vadd.f32 %v2986_v8, %v2973_v47 }
 0x246   : > { %v3014_v12 = vpop.f32.mrf.mxu1 }
 0x247   : > { %v3013_v19 = vadd.f32 %v3012_v57, %v2999_v18 }
 0x249   : > { %4912 = vtanh.f32 %v3013_v19 }
 0x24c   : > { %v3000_v21 = vpop.f32.mrf.mxu0 }
 0x24d   : > { %v3001_v26 = vadd.f32 %v3000_v21, %v2987_v4 }
 0x24f   : > { %v4913_v1 = vpop.eup %4912  ;;  %v3015_v22 = vadd.f32 %v3014_v12, %v3001_v26 }
 0x250   : > { %3147 = vst [vmem:[%s7196_s20 + $0x20] sm:$0xff] %v4913_v1 }
 0x251   : > { %4914 = vtanh.f32 %v3015_v22 }
 0x254   : > { %v3040_v33 = vpop.f32.mrf.mxu3 }
 0x257   : > { %v4915_v28 = vpop.eup %4914 }
 0x258   : > { %3155 = vst [vmem:[%s7196_s20 + $0x58] sm:$0xff] %v4915_v28 }
 0x25a   : > { %v3026_v29 = vpop.f32.mrf.mxu2 }
 0x25b   : > { %v3027_v60 = vadd.f32 %v3026_v29, %v1576_v59 }
 0x25c   : > { %v3042_v62 = vpop.f32.mrf.mxu3 }
 0x25d   : > { %v3041_v13 = vadd.f32 %v3040_v33, %v3027_v60 }
 0x25e   : > { %v3068_v37 = vpop.f32.mrf.mxu1 }
 0x262   : > { %v3028_v42 = vpop.f32.mrf.mxu2 }
 0x263   : > { %v3029_v23 = vadd.f32 %v3028_v42, %v1576_v59 }
 0x264   : > { %v3054_v38 = vpop.f32.mrf.mxu0 }
 0x265   : > { %v3055_v50 = vadd.f32 %v3054_v38, %v3041_v13  ;;  %v3043_v43 = vadd.f32 %v3042_v62, %v3029_v23 }
 0x266   : > { %v3070_v55 = vpop.f32.mrf.mxu1 }
 0x267   : > { %v3069_v27 = vadd.f32 %v3068_v37, %v3055_v50 }
 0x269   : > { %4916 = vtanh.f32 %v3069_v27 }
 0x26c   : > { %v3056_v17 = vpop.f32.mrf.mxu0 }
 0x26d   : > { %v3057_v44 = vadd.f32 %v3056_v17, %v3043_v43 }
 0x26f   : > { %v4917_v36 = vpop.eup %4916  ;;  %v3071_v46 = vadd.f32 %v3070_v55, %v3057_v44 }
 0x270   : > { %3148 = vst [vmem:[%s7196_s20 + $0x28] sm:$0xff] %v4917_v36 }
 0x271   : > { %4918 = vtanh.f32 %v3071_v46 }
 0x274   : > { %v3096_v56 = vpop.f32.mrf.mxu3 }
 0x277   : > { %v4919_v34 = vpop.eup %4918 }
 0x278   : > { %3156 = vst [vmem:[%s7196_s20 + $0x60] sm:$0xff] %v4919_v34 }
 0x27a   : > { %v3082_v35 = vpop.f32.mrf.mxu2 }
 0x27b   : > { %v3083_v41 = vadd.f32 %v3082_v35, %v1577_v40 }
 0x27c   : > { %v3098_v16 = vpop.f32.mrf.mxu3 }
 0x27d   : > { %v3097_v32 = vadd.f32 %v3096_v56, %v3083_v41 }
 0x27e   : > { %v3124_v61 = vpop.f32.mrf.mxu1 }
 0x282   : > { %v3084_v2 = vpop.f32.mrf.mxu2 }
 0x283   : > { %v3085_v49 = vadd.f32 %v3084_v2, %v1577_v40 }
 0x284   : > { %v3110_v5 = vpop.f32.mrf.mxu0 }
 0x285   : > { %v3111_v58 = vadd.f32 %v3110_v5, %v3097_v32  ;;  %v3099_v51 = vadd.f32 %v3098_v16, %v3085_v49 }
 0x286   : > { %v3126_v3 = vpop.f32.mrf.mxu1 }
 0x287   : > { %v3125_v6 = vadd.f32 %v3124_v61, %v3111_v58 }
 0x289   : > { %4920 = vtanh.f32 %v3125_v6 }
 0x28c   : > { %v3112_v0 = vpop.f32.mrf.mxu0 }
 0x28d   : > { %v3113_v48 = vadd.f32 %v3112_v0, %v3099_v51 }
 0x28f   : > { %v4921_v53 = vpop.eup %4920  ;;  %v3127_v9 = vadd.f32 %v3126_v3, %v3113_v48 }
 0x290   : > { %3150 = vst.msk [vmem:[%s7196_s20 + $0x30] sm:$0xff] %vm3149_vm2, %v4921_v53 }
 0x291   : > { %4922 = vtanh.f32 %v3127_v9 }
 0x297   : > { %v4923_v14 = vpop.eup %4922 }
 0x298   : > { %3157 = vst.msk [vmem:[%s7196_s20 + $0x68] sm:$0xff] %vm3149_vm2, %v4923_v14 }
 0x299   : > { %4951 = shalt.err (!%p4948_p3)
}
 0x29a   : > { %s4990_s18 = smov 896   ;;  %s4991_s20 = smov 56  }
 0x29b   : > { %4800 = dma.vmem_to_hbm [thread:$0]  (%p5075_p5), %s3173_s17, 1792, %s3175_s23, %s3159_s9, %s4990_s18, %s4990_s18, %s4991_s20  }
 0x29c PF: > { %p4806_p4 = scmp.ge.s32.totalorder %s4986_s30, 2  ;;  %s3189_s12 = sand.u32 1, %s4974_s27  }
 0x29d   : > { %s3190_s13 = scalar_lea.sflag [#allocation3], %s3189_s12 }
 0x29e   : > { %p4803_p7 = pnand %p4806_p4, %p5079_p6 }
 0x2a0   : > { %p4804_p8 = pneg %p4803_p7 }
 0x2a2   : > { %4969 = dma.done.wait (%p4804_p8), %s3190_s13, 1792  }
 0x2a3   : > { %4971 = vsyncadd (%p4804_p8), %s3190_s13, 4294965504  ;;  %p18_p9 = scmp.ge.s32.totalorder %s5062_s11, 6   ;;  %s7270_s27 = smov %s4978_s28 }
 0x2a4   : > { %s7271_s28 = smov %s4982_s29  ;;  %s7272_s29 = smov %s5073_s14 }
 0x2a5   : > { %s7273_s30 = smov %s5062_s11  ;;  %20 = sbr.rel (!%p18_p9) target bundleno = 3 (0x3), region = 99 }
 0x2aa   :  { %3196 = vsyncpa [#allocation3], 1 }
 0x2ab   :  { %3198 = vsyncpa [#allocation3 + $0x1], 1 }

</bundles_post_ra>
